<compile_context>
chip_gen: v5e
topology: v5e:2x2
jax: 0.10.0
libtpu: 0.0.40
codegen_flags: <defaults>
</compile_context>

<pallas_src>
import functools
import math

import jax
import jax.numpy as jnp
from jax.experimental import pallas as pl
from jax.experimental.pallas import tpu as pltpu


def _round_up(x: int, m: int) -> int:
    return (x + m - 1) // m * m


def _cdiv(a: int, b: int) -> int:
    return (a + b - 1) // b


def _largest_divisor_le(n: int, target: int) -> int:
    """Largest divisor of n that is <= target (n >= 1)."""
    target = max(1, min(n, target))
    for d in range(target, 0, -1):
        if n % d == 0:
            return d
    return 1


def _vmem_capacity_bytes() -> int:
    try:
        return int(pltpu.get_tpu_info().vmem_capacity_bytes)
    except Exception:
        return 64 * 1024 * 1024  # conservative default (v7x per-TC VMEM)


def glu_kernel(*refs, gated: bool):
    if gated:
        (x_ref, w1_ref, w2_ref, b1_ref, b2_ref,
         wout_ref, bout_ref, o_ref, acc_ref) = refs
    else:
        (x_ref, w1_ref, b1_ref,
         wout_ref, bout_ref, o_ref, acc_ref) = refs

    k = pl.program_id(1)

    @pl.when(k == 0)
    def _():
        acc_ref[...] = jnp.zeros_like(acc_ref)

    # Native-dtype MXU operands (bf16 stays bf16), f32 accumulation.
    x = x_ref[...]                                           # [tm, E]
    w_out = wout_ref[...]                                    # [th, E]

    h1 = jnp.dot(x, w1_ref[...], preferred_element_type=jnp.float32)
    h1 = h1 + b1_ref[...].astype(jnp.float32)                # [tm, th]
    if gated:
        h2 = jnp.dot(x, w2_ref[...], preferred_element_type=jnp.float32)
        h2 = h2 + b2_ref[...].astype(jnp.float32)
        a = (h1 * jax.nn.sigmoid(h1)) * h2                   # SiLU(x1) * x2
    else:
        a = h1 * jax.nn.sigmoid(h1)                          # SiLU(h)

    # TODO(synk): dropout omitted (module default p=0.0 / eval -> identity)

    # Partial out-projection for this hidden block, accumulated in f32.
    acc_ref[...] += jnp.dot(a.astype(w_out.dtype), w_out,
                            preferred_element_type=jnp.float32)

    @pl.when(k == pl.num_programs(1) - 1)
    def _():
        # b_out added exactly once, at finalize.
        o_ref[...] = (acc_ref[...]
                      + bout_ref[...].astype(jnp.float32)).astype(o_ref.dtype)


def init_glu_params(key, embed_dim: int, hidden_dim: int | None, gated: bool,
                    dtype=jnp.float32, weight_dtype=None):
    """Deterministic parameter init; PyTorch Linear convention (out, in).

    Kernel-layout copies (transpose / split / optional cast) are made ONCE so
    the kernel never pays a per-forward HBM transpose.  Pass
    weight_dtype=jnp.bfloat16 to halve weight HBM traffic and VMEM footprint.
    """
    if hidden_dim is None:
        hidden_dim = embed_dim * 2
    if weight_dtype is None:
        weight_dtype = dtype
    h_total = hidden_dim * (2 if gated else 1)
    k1, k2, k3, k4 = jax.random.split(key, 4)
    s_in = 1.0 / math.sqrt(embed_dim)
    s_out = 1.0 / math.sqrt(hidden_dim)
    w_in = jax.random.uniform(k1, (h_total, embed_dim), dtype, -s_in, s_in)
    b_in = jax.random.uniform(k2, (h_total,), dtype, -s_in, s_in)
    w_out = jax.random.uniform(k3, (embed_dim, hidden_dim), dtype, -s_out, s_out)
    b_out = jax.random.uniform(k4, (embed_dim,), dtype, -s_out, s_out)

    w1_t = jnp.asarray(w_in[:hidden_dim].T, weight_dtype)          # [E, H] value
    w2_t = (jnp.asarray(w_in[hidden_dim:].T, weight_dtype)
            if gated else None)                                     # [E, H] gate
    wout_t = jnp.asarray(w_out.T, weight_dtype)                    # [H, E]
    b1 = b_in[:hidden_dim].reshape(1, hidden_dim)
    b2 = b_in[hidden_dim:].reshape(1, hidden_dim) if gated else None
    bout = b_out.reshape(1, embed_dim)

    return dict(w_in=w_in, b_in=b_in, w_out=w_out, b_out=b_out,
                w1_t=w1_t, w2_t=w2_t, wout_t=wout_t,
                b1=b1, b2=b2, bout=bout,
                hidden_dim=hidden_dim, gated=gated)


def _pick_tiles(M, E, H, gated, x_bytes, w_bytes, vmem_cap, tm_req, th_req):
    """Choose (tm, th, Mp, weights_resident) from the VMEM budget."""
    tile_budget = int(vmem_cap * 0.70)      # blocks/scratch; rest = temporaries
    n_w = 3 if gated else 2                 # W1 (+W2) + W_out

    def act_row_bytes(th):
        # Per row of tm: x + out blocks (double-buffered), f32 accumulator row,
        # plus a rough allowance for the live-step f32 h1/(h2)/a temporaries.
        return E * (4 * x_bytes + 4) + th * 4 * (3 if gated else 2)

    def w_block_bytes(th):
        return 2 * n_w * E * th * w_bytes   # budget 2 pipeline buffers (safe)

    # ---- hidden tile th --------------------------------------------------
    if th_req is not None:
        th = int(th_req)
        assert th % 128 == 0 and H % th == 0, \
            "th must be a 128-multiple divisor of hidden_dim"
    else:
        want_rows = min(_round_up(max(M, 8), 8), 128)
        if w_block_bytes(H) + act_row_bytes(H) * want_rows <= tile_budget:
            th = H                           # hold the full weight set resident
        else:
            nblk = H // 128
            th = 128 * _largest_divisor_le(nblk, max(1, 512 // 128))
            while th > 128 and (w_block_bytes(th)
                                + act_row_bytes(th) * 128 > tile_budget):
                th = 128 * _largest_divisor_le(nblk, th // 128 - 1)

    resident = (th == H) and (w_block_bytes(H) + act_row_bytes(H) * 8
                              <= tile_budget)

    # ---- row tile tm (the main arithmetic-intensity lever) ---------------
    if tm_req is not None:
        tm = _round_up(min(int(tm_req), _round_up(M, 8)), 8)
    else:
        avail = max(tile_budget - w_block_bytes(th), act_row_bytes(th) * 8)
        tm_cap = max(8, min(1024, avail // act_row_bytes(th)))
        tm_cap = max(8, (tm_cap // 8) * 8)
        ntiles = _cdiv(M, tm_cap)
        if resident and M >= 512 and ntiles < 2:
            # Keep both v7x TensorCores busy; weights are DMA'd once either way.
            ntiles = 2
        tm = _round_up(_cdiv(M, ntiles), 8)

    # NOTE: for very large E (>= 8192) an extra grid axis over W_out's columns
    # (tiling the (tm, E) acc/out blocks) would free VMEM to keep tm large.
    Mp = tm * _cdiv(M, tm)
    return tm, th, Mp, resident


def glu_forward(x, params, *, tm: int | None = None, th: int | None = None):
    B, S, E = x.shape
    M = B * S
    H = int(params["hidden_dim"])
    gated = bool(params["gated"])

    assert E % 128 == 0, "embed_dim must be a multiple of 128 (lane-dense tiles)"
    assert H % 128 == 0, "hidden_dim must be a multiple of 128 (lane-dense tiles)"

    x_bytes = jnp.dtype(x.dtype).itemsize
    w_bytes = jnp.dtype(params["wout_t"].dtype).itemsize
    vmem_cap = _vmem_capacity_bytes()
    vmem_limit = int(vmem_cap * 0.85)

    tm, th, Mp, resident = _pick_tiles(M, E, H, gated, x_bytes, w_bytes,
                                       vmem_cap, tm, th)
    n_row_tiles = Mp // tm

    x2d = x.reshape(M, E)
    if Mp != M:                               # minimal padding (<= 8 rows/tile)
        x2d = jnp.pad(x2d, ((0, Mp - M), (0, 0)))

    n_w = 3 if gated else 2
    weight_bytes = n_w * E * H * w_bytes
    cost = pl.CostEstimate(
        flops=int((6 if gated else 4) * Mp * E * H),
        transcendentals=int(Mp * H),          # one sigmoid per hidden activation
        bytes_accessed=int(2 * M * E * x_bytes
                           + weight_bytes * (1 if resident else n_row_tiles)))

    if gated:
        inputs = (x2d, params["w1_t"], params["w2_t"], params["b1"],
                  params["b2"], params["wout_t"], params["bout"])
    else:
        inputs = (x2d, params["w1_t"], params["b1"],
                  params["wout_t"], params["bout"])

    def _call(buffer_weights_once: bool):
        wkw = ({"pipeline_mode": pl.Buffered(1)} if buffer_weights_once else {})
        if gated:
            in_specs = [
                pl.BlockSpec((tm, E), lambda i, k: (i, 0)),           # x rows
                pl.BlockSpec((E, th), lambda i, k: (0, k), **wkw),    # W1 value
                pl.BlockSpec((E, th), lambda i, k: (0, k), **wkw),    # W2 gate
                pl.BlockSpec((1, th), lambda i, k: (0, k)),           # b1
                pl.BlockSpec((1, th), lambda i, k: (0, k)),           # b2
                pl.BlockSpec((th, E), lambda i, k: (k, 0), **wkw),    # W_out
                pl.BlockSpec((1, E), lambda i, k: (0, 0)),            # b_out
            ]
        else:
            in_specs = [
                pl.BlockSpec((tm, E), lambda i, k: (i, 0)),
                pl.BlockSpec((E, th), lambda i, k: (0, k), **wkw),
                pl.BlockSpec((1, th), lambda i, k: (0, k)),
                pl.BlockSpec((th, E), lambda i, k: (k, 0), **wkw),
                pl.BlockSpec((1, E), lambda i, k: (0, 0)),
            ]
        return pl.pallas_call(
            functools.partial(glu_kernel, gated=gated),
            out_shape=jax.ShapeDtypeStruct((Mp, E), x.dtype),
            grid=(n_row_tiles, H // th),
            in_specs=in_specs,
            out_specs=pl.BlockSpec((tm, E), lambda i, k: (i, 0)),
            scratch_shapes=[pltpu.VMEM((tm, E), jnp.float32)],   # f32 accumulator
            compiler_params=pltpu.CompilerParams(
                dimension_semantics=("parallel", "arbitrary"),
                vmem_limit_bytes=vmem_limit),
            cost_estimate=cost,
        )(*inputs)

    if resident:
        # Weights are DMA'd once for the whole call (constant index_map), so a
        # single buffer suffices; fall back to default double-buffering if this
        # JAX build rejects pipeline_mode=pl.Buffered(1).
        try:
            out2d = _call(True)
        except Exception:
            out2d = _call(False)
    else:
        out2d = _call(False)

    if Mp != M:
        out2d = out2d[:M]
    return out2d.reshape(B, S, E)


def glu_reference(x, params):
    """Pure-JAX reference mirroring the PyTorch forward."""
    h = jnp.einsum("bse,he->bsh", x, params["w_in"]) + params["b_in"]
    if params["gated"]:
        x1, x2 = jnp.split(h, 2, axis=-1)
        a = jax.nn.silu(x1) * x2
    else:
        a = jax.nn.silu(h)
    return jnp.einsum("bsh,eh->bse", a, params["w_out"]) + params["b_out"]


if __name__ == "__main__":
    key = jax.random.PRNGKey(0)
    kx, kx2, kp1, kp2 = jax.random.split(key, 4)

    ok = True

    # Small shapes consistent with the module: E=128 (lane-dense), hidden=2E=256.
    batch, seq, embed_dim = 2, 8, 128            # M = 16 tokens
    x = jax.random.normal(kx, (batch, seq, embed_dim), jnp.float32)

    # gated=True (true GLU) and gated=False (plain SiLU MLP, module default).
    for gated, kp in ((True, kp1), (False, kp2)):
        params = init_glu_params(kp, embed_dim, None, gated)   # hidden = 256
        out = jax.block_until_ready(glu_forward(x, params))
        ref = glu_reference(x, params)
        assert out.shape == (batch, seq, embed_dim)
        ok &= bool(jnp.allclose(out, ref, atol=1e-4, rtol=1e-4))

    # Multi-row-tile path: M = 640 >= 512 forces >= 2 row tiles ("parallel" axis).
    params = init_glu_params(kp1, embed_dim, None, True)
    x_big = jax.random.normal(kx2, (4, 160, embed_dim), jnp.float32)
    out = jax.block_until_ready(glu_forward(x_big, params))
    ok &= bool(jnp.allclose(out, glu_reference(x_big, params),
                            atol=1e-4, rtol=1e-4))

    # Hidden-dim-tiled accumulator path (th < H -> k grid axis of length 2).
    out = jax.block_until_ready(glu_forward(x, params, th=128))
    ok &= bool(jnp.allclose(out, glu_reference(x, params), atol=1e-4, rtol=1e-4))

    # Native-bf16 MXU path (loose tolerance for bf16 rounding).
    params_bf = init_glu_params(kp1, embed_dim, None, True, dtype=jnp.bfloat16)
    x_bf = x.astype(jnp.bfloat16)
    out_bf = jax.block_until_ready(glu_forward(x_bf, params_bf))
    ref_bf = glu_reference(x_bf, params_bf)
    ok &= bool(jnp.allclose(out_bf.astype(jnp.float32),
                            ref_bf.astype(jnp.float32), atol=0.1, rtol=0.1))

    if ok:
        print("KERNEL_OK")
    else:
        raise SystemExit("mismatch vs reference")
</pallas_src>

<mosaic_0001>
module attributes {stable_mosaic.version = 11 : i64} {
  func.func @glu_kernel(%arg0: i32, %arg1: i32, %arg2: memref<16x128xf32, #tpu.memory_space<vmem>>, %arg3: memref<128x256xf32, #tpu.memory_space<vmem>>, %arg4: memref<128x256xf32, #tpu.memory_space<vmem>>, %arg5: memref<1x256xf32, #tpu.memory_space<vmem>>, %arg6: memref<1x256xf32, #tpu.memory_space<vmem>>, %arg7: memref<256x128xf32, #tpu.memory_space<vmem>>, %arg8: memref<1x128xf32, #tpu.memory_space<vmem>>, %arg9: memref<16x128xf32, #tpu.memory_space<vmem>>, %arg10: memref<16x128xf32, #tpu.memory_space<vmem>>) attributes {dimension_semantics = [#tpu.dimension_semantics<parallel>, #tpu.dimension_semantics<arbitrary>], iteration_bounds = array<i64: 1, 1>, scalar_prefetch = 0 : i64, scratch_operands = 1 : i64, tpu.core_type = #tpu.core_type<tc>, window_params = [{transform_indices = @transform_0, window_bounds = array<i64: 16, 128>}, {pipeline_mode = #tpu.pipeline_mode<synchronous>, transform_indices = @transform_1, window_bounds = array<i64: 128, 256>}, {pipeline_mode = #tpu.pipeline_mode<synchronous>, transform_indices = @transform_2, window_bounds = array<i64: 128, 256>}, {transform_indices = @transform_3, window_bounds = array<i64: 1, 256>}, {transform_indices = @transform_4, window_bounds = array<i64: 1, 256>}, {pipeline_mode = #tpu.pipeline_mode<synchronous>, transform_indices = @transform_5, window_bounds = array<i64: 256, 128>}, {pipeline_mode = #tpu.pipeline_mode<synchronous>, transform_indices = @transform_6, window_bounds = array<i64: 1, 128>}, {transform_indices = @transform_7, window_bounds = array<i64: 16, 128>}]} {
    %c0_i32 = arith.constant 0 : i32
    %0 = arith.cmpi eq, %arg1, %c0_i32 : i32
    %1 = arith.extui %0 : i1 to i32
    %c0_i32_0 = arith.constant 0 : i32
    %2 = arith.cmpi ne, %1, %c0_i32_0 : i32
    scf.if %2 {
      %cst_21 = arith.constant 0.000000e+00 : f32
      %29 = vector.broadcast %cst_21 : f32 to vector<16x128xf32>
      %c0_22 = arith.constant 0 : index
      %c0_23 = arith.constant 0 : index
      %30 = vector.load %arg10[%c0_22, %c0_23] : memref<16x128xf32, #tpu.memory_space<vmem>>, vector<16x128xf32>
      tpu.vector_store %arg10[%c0_22, %c0_23], %29 {strides = array<i32>} : memref<16x128xf32, #tpu.memory_space<vmem>>, vector<16x128xf32>,
    } else {
    }
    %c0 = arith.constant 0 : index
    %c0_1 = arith.constant 0 : index
    %3 = vector.load %arg2[%c0, %c0_1] : memref<16x128xf32, #tpu.memory_space<vmem>>, vector<16x128xf32>
    %c0_2 = arith.constant 0 : index
    %c0_3 = arith.constant 0 : index
    %4 = vector.load %arg7[%c0_2, %c0_3] : memref<256x128xf32, #tpu.memory_space<vmem>>, vector<256x128xf32>
    %c0_4 = arith.constant 0 : index
    %c0_5 = arith.constant 0 : index
    %5 = vector.load %arg3[%c0_4, %c0_5] : memref<128x256xf32, #tpu.memory_space<vmem>>, vector<128x256xf32>
    %cst = arith.constant dense<0.000000e+00> : vector<16x256xf32>
    %6 = tpu.matmul %3, %5, %cst {dimension_numbers = #tpu.dot_dimension_numbers<[1], [0], [0], [1], [0, 0, 1, 1], [], []>} : vector<16x128xf32>, vector<128x256xf32>, vector<16x256xf32> -> vector<16x256xf32>
    %c0_6 = arith.constant 0 : index
    %c0_7 = arith.constant 0 : index
    %7 = vector.load %arg5[%c0_6, %c0_7] : memref<1x256xf32, #tpu.memory_space<vmem>>, vector<1x256xf32>
    %8 = vector.broadcast %7 : vector<1x256xf32> to vector<16x256xf32>
    %9 = arith.addf %6, %8 : vector<16x256xf32>
    %c0_8 = arith.constant 0 : index
    %c0_9 = arith.constant 0 : index
    %10 = vector.load %arg4[%c0_8, %c0_9] : memref<128x256xf32, #tpu.memory_space<vmem>>, vector<128x256xf32>
    %cst_10 = arith.constant dense<0.000000e+00> : vector<16x256xf32>
    %11 = tpu.matmul %3, %10, %cst_10 {dimension_numbers = #tpu.dot_dimension_numbers<[1], [0], [0], [1], [0, 0, 1, 1], [], []>} : vector<16x128xf32>, vector<128x256xf32>, vector<16x256xf32> -> vector<16x256xf32>
    %c0_11 = arith.constant 0 : index
    %c0_12 = arith.constant 0 : index
    %12 = vector.load %arg6[%c0_11, %c0_12] : memref<1x256xf32, #tpu.memory_space<vmem>>, vector<1x256xf32>
    %13 = vector.broadcast %12 : vector<1x256xf32> to vector<16x256xf32>
    %14 = arith.addf %11, %13 : vector<16x256xf32>
    %15 = arith.negf %9 : vector<16x256xf32>
    %16 = math.exp %15 : vector<16x256xf32>
    %cst_13 = arith.constant 1.000000e+00 : f32
    %17 = vector.broadcast %cst_13 : f32 to vector<16x256xf32>
    %18 = arith.addf %17, %16 : vector<16x256xf32>
    %19 = arith.divf %17, %18 : vector<16x256xf32>
    %20 = arith.mulf %9, %19 : vector<16x256xf32>
    %21 = arith.mulf %20, %14 : vector<16x256xf32>
    %c0_14 = arith.constant 0 : index
    %c0_15 = arith.constant 0 : index
    %22 = vector.load %arg10[%c0_14, %c0_15] : memref<16x128xf32, #tpu.memory_space<vmem>>, vector<16x128xf32>
    %cst_16 = arith.constant dense<0.000000e+00> : vector<16x128xf32>
    %23 = tpu.matmul %21, %4, %cst_16 {dimension_numbers = #tpu.dot_dimension_numbers<[1], [0], [0], [1], [0, 0, 1, 1], [], []>} : vector<16x256xf32>, vector<256x128xf32>, vector<16x128xf32> -> vector<16x128xf32>
    %24 = arith.addf %22, %23 : vector<16x128xf32>
    %c0_17 = arith.constant 0 : index
    %c0_18 = arith.constant 0 : index
    %25 = vector.load %arg10[%c0_17, %c0_18] : memref<16x128xf32, #tpu.memory_space<vmem>>, vector<16x128xf32>
    tpu.vector_store %arg10[%c0_17, %c0_18], %24 {strides = array<i32>} : memref<16x128xf32, #tpu.memory_space<vmem>>, vector<16x128xf32>,
    %c0_i32_19 = arith.constant 0 : i32
    %26 = arith.cmpi eq, %arg1, %c0_i32_19 : i32
    %27 = arith.extui %26 : i1 to i32
    %c0_i32_20 = arith.constant 0 : i32
    %28 = arith.cmpi ne, %27, %c0_i32_20 : i32
    scf.if %28 {
      %c0_21 = arith.constant 0 : index
      %c0_22 = arith.constant 0 : index
      %29 = vector.load %arg10[%c0_21, %c0_22] : memref<16x128xf32, #tpu.memory_space<vmem>>, vector<16x128xf32>
      %c0_23 = arith.constant 0 : index
      %c0_24 = arith.constant 0 : index
      %30 = vector.load %arg8[%c0_23, %c0_24] : memref<1x128xf32, #tpu.memory_space<vmem>>, vector<1x128xf32>
      %31 = vector.broadcast %30 : vector<1x128xf32> to vector<16x128xf32>
      %32 = arith.addf %29, %31 : vector<16x128xf32>
      %c0_25 = arith.constant 0 : index
      %c0_26 = arith.constant 0 : index
      %33 = vector.load %arg9[%c0_25, %c0_26] : memref<16x128xf32, #tpu.memory_space<vmem>>, vector<16x128xf32>
      tpu.vector_store %arg9[%c0_25, %c0_26], %32 {strides = array<i32>} : memref<16x128xf32, #tpu.memory_space<vmem>>, vector<16x128xf32>,
    } else {
    }
    return
  }
  func.func @transform_0(%arg0: i32, %arg1: i32) -> (i32, i32) {
    %c0_i32 = arith.constant 0 : i32
    %c0_i32_0 = arith.constant 0 : i32
    return %arg0, %c0_i32 : i32, i32
  }
  func.func @transform_1(%arg0: i32, %arg1: i32) -> (i32, i32) {
    %c0_i32 = arith.constant 0 : i32
    %c0_i32_0 = arith.constant 0 : i32
    return %c0_i32, %arg1 : i32, i32
  }
  func.func @transform_2(%arg0: i32, %arg1: i32) -> (i32, i32) {
    %c0_i32 = arith.constant 0 : i32
    %c0_i32_0 = arith.constant 0 : i32
    return %c0_i32, %arg1 : i32, i32
  }
  func.func @transform_3(%arg0: i32, %arg1: i32) -> (i32, i32) {
    %c0_i32 = arith.constant 0 : i32
    %c0_i32_0 = arith.constant 0 : i32
    return %c0_i32, %arg1 : i32, i32
  }
  func.func @transform_4(%arg0: i32, %arg1: i32) -> (i32, i32) {
    %c0_i32 = arith.constant 0 : i32
    %c0_i32_0 = arith.constant 0 : i32
    return %c0_i32, %arg1 : i32, i32
  }
  func.func @transform_5(%arg0: i32, %arg1: i32) -> (i32, i32) {
    %c0_i32 = arith.constant 0 : i32
    %c0_i32_0 = arith.constant 0 : i32
    return %arg1, %c0_i32 : i32, i32
  }
  func.func @transform_6(%arg0: i32, %arg1: i32) -> (i32, i32) {
    %c0_i32 = arith.constant 0 : i32
    %c0_i32_0 = arith.constant 0 : i32
    %c0_i32_1 = arith.constant 0 : i32
    return %c0_i32, %c0_i32_0 : i32, i32
  }
  func.func @transform_7(%arg0: i32, %arg1: i32) -> (i32, i32) {
    %c0_i32 = arith.constant 0 : i32
    %c0_i32_0 = arith.constant 0 : i32
    return %arg0, %c0_i32 : i32, i32
  }
}

module attributes {stable_mosaic.version = 11 : i64} {
  func.func @glu_kernel(%arg0: i32, %arg1: i32, %arg2: memref<16x128xf32, #tpu.memory_space<vmem>>, %arg3: memref<128x256xf32, #tpu.memory_space<vmem>>, %arg4: memref<128x256xf32, #tpu.memory_space<vmem>>, %arg5: memref<1x256xf32, #tpu.memory_space<vmem>>, %arg6: memref<1x256xf32, #tpu.memory_space<vmem>>, %arg7: memref<256x128xf32, #tpu.memory_space<vmem>>, %arg8: memref<1x128xf32, #tpu.memory_space<vmem>>, %arg9: memref<16x128xf32, #tpu.memory_space<vmem>>, %arg10: memref<16x128xf32, #tpu.memory_space<vmem>>) attributes {dimension_semantics = [#tpu.dimension_semantics<parallel>, #tpu.dimension_semantics<arbitrary>], iteration_bounds = array<i64: 1, 1>, scalar_prefetch = 0 : i64, scratch_operands = 1 : i64, tpu.core_type = #tpu.core_type<tc>, window_params = [{transform_indices = @transform_0, window_bounds = array<i64: 16, 128>}, {transform_indices = @transform_1, window_bounds = array<i64: 128, 256>}, {transform_indices = @transform_2, window_bounds = array<i64: 128, 256>}, {transform_indices = @transform_3, window_bounds = array<i64: 1, 256>}, {transform_indices = @transform_4, window_bounds = array<i64: 1, 256>}, {transform_indices = @transform_5, window_bounds = array<i64: 256, 128>}, {pipeline_mode = #tpu.pipeline_mode<synchronous>, transform_indices = @transform_6, window_bounds = array<i64: 1, 128>}, {transform_indices = @transform_7, window_bounds = array<i64: 16, 128>}]} {
    %c0_i32 = arith.constant 0 : i32
    %0 = arith.cmpi eq, %arg1, %c0_i32 : i32
    %1 = arith.extui %0 : i1 to i32
    %c0_i32_0 = arith.constant 0 : i32
    %2 = arith.cmpi ne, %1, %c0_i32_0 : i32
    scf.if %2 {
      %cst_21 = arith.constant 0.000000e+00 : f32
      %29 = vector.broadcast %cst_21 : f32 to vector<16x128xf32>
      %c0_22 = arith.constant 0 : index
      %c0_23 = arith.constant 0 : index
      %30 = vector.load %arg10[%c0_22, %c0_23] : memref<16x128xf32, #tpu.memory_space<vmem>>, vector<16x128xf32>
      tpu.vector_store %arg10[%c0_22, %c0_23], %29 {strides = array<i32>} : memref<16x128xf32, #tpu.memory_space<vmem>>, vector<16x128xf32>,
    } else {
    }
    %c0 = arith.constant 0 : index
    %c0_1 = arith.constant 0 : index
    %3 = vector.load %arg2[%c0, %c0_1] : memref<16x128xf32, #tpu.memory_space<vmem>>, vector<16x128xf32>
    %c0_2 = arith.constant 0 : index
    %c0_3 = arith.constant 0 : index
    %4 = vector.load %arg7[%c0_2, %c0_3] : memref<256x128xf32, #tpu.memory_space<vmem>>, vector<256x128xf32>
    %c0_4 = arith.constant 0 : index
    %c0_5 = arith.constant 0 : index
    %5 = vector.load %arg3[%c0_4, %c0_5] : memref<128x256xf32, #tpu.memory_space<vmem>>, vector<128x256xf32>
    %cst = arith.constant dense<0.000000e+00> : vector<16x256xf32>
    %6 = tpu.matmul %3, %5, %cst {dimension_numbers = #tpu.dot_dimension_numbers<[1], [0], [0], [1], [0, 0, 1, 1], [], []>} : vector<16x128xf32>, vector<128x256xf32>, vector<16x256xf32> -> vector<16x256xf32>
    %c0_6 = arith.constant 0 : index
    %c0_7 = arith.constant 0 : index
    %7 = vector.load %arg5[%c0_6, %c0_7] : memref<1x256xf32, #tpu.memory_space<vmem>>, vector<1x256xf32>
    %8 = vector.broadcast %7 : vector<1x256xf32> to vector<16x256xf32>
    %9 = arith.addf %6, %8 : vector<16x256xf32>
    %c0_8 = arith.constant 0 : index
    %c0_9 = arith.constant 0 : index
    %10 = vector.load %arg4[%c0_8, %c0_9] : memref<128x256xf32, #tpu.memory_space<vmem>>, vector<128x256xf32>
    %cst_10 = arith.constant dense<0.000000e+00> : vector<16x256xf32>
    %11 = tpu.matmul %3, %10, %cst_10 {dimension_numbers = #tpu.dot_dimension_numbers<[1], [0], [0], [1], [0, 0, 1, 1], [], []>} : vector<16x128xf32>, vector<128x256xf32>, vector<16x256xf32> -> vector<16x256xf32>
    %c0_11 = arith.constant 0 : index
    %c0_12 = arith.constant 0 : index
    %12 = vector.load %arg6[%c0_11, %c0_12] : memref<1x256xf32, #tpu.memory_space<vmem>>, vector<1x256xf32>
    %13 = vector.broadcast %12 : vector<1x256xf32> to vector<16x256xf32>
    %14 = arith.addf %11, %13 : vector<16x256xf32>
    %15 = arith.negf %9 : vector<16x256xf32>
    %16 = math.exp %15 : vector<16x256xf32>
    %cst_13 = arith.constant 1.000000e+00 : f32
    %17 = vector.broadcast %cst_13 : f32 to vector<16x256xf32>
    %18 = arith.addf %17, %16 : vector<16x256xf32>
    %19 = arith.divf %17, %18 : vector<16x256xf32>
    %20 = arith.mulf %9, %19 : vector<16x256xf32>
    %21 = arith.mulf %20, %14 : vector<16x256xf32>
    %c0_14 = arith.constant 0 : index
    %c0_15 = arith.constant 0 : index
    %22 = vector.load %arg10[%c0_14, %c0_15] : memref<16x128xf32, #tpu.memory_space<vmem>>, vector<16x128xf32>
    %cst_16 = arith.constant dense<0.000000e+00> : vector<16x128xf32>
    %23 = tpu.matmul %21, %4, %cst_16 {dimension_numbers = #tpu.dot_dimension_numbers<[1], [0], [0], [1], [0, 0, 1, 1], [], []>} : vector<16x256xf32>, vector<256x128xf32>, vector<16x128xf32> -> vector<16x128xf32>
    %24 = arith.addf %22, %23 : vector<16x128xf32>
    %c0_17 = arith.constant 0 : index
    %c0_18 = arith.constant 0 : index
    %25 = vector.load %arg10[%c0_17, %c0_18] : memref<16x128xf32, #tpu.memory_space<vmem>>, vector<16x128xf32>
    tpu.vector_store %arg10[%c0_17, %c0_18], %24 {strides = array<i32>} : memref<16x128xf32, #tpu.memory_space<vmem>>, vector<16x128xf32>,
    %c0_i32_19 = arith.constant 0 : i32
    %26 = arith.cmpi eq, %arg1, %c0_i32_19 : i32
    %27 = arith.extui %26 : i1 to i32
    %c0_i32_20 = arith.constant 0 : i32
    %28 = arith.cmpi ne, %27, %c0_i32_20 : i32
    scf.if %28 {
      %c0_21 = arith.constant 0 : index
      %c0_22 = arith.constant 0 : index
      %29 = vector.load %arg10[%c0_21, %c0_22] : memref<16x128xf32, #tpu.memory_space<vmem>>, vector<16x128xf32>
      %c0_23 = arith.constant 0 : index
      %c0_24 = arith.constant 0 : index
      %30 = vector.load %arg8[%c0_23, %c0_24] : memref<1x128xf32, #tpu.memory_space<vmem>>, vector<1x128xf32>
      %31 = vector.broadcast %30 : vector<1x128xf32> to vector<16x128xf32>
      %32 = arith.addf %29, %31 : vector<16x128xf32>
      %c0_25 = arith.constant 0 : index
      %c0_26 = arith.constant 0 : index
      %33 = vector.load %arg9[%c0_25, %c0_26] : memref<16x128xf32, #tpu.memory_space<vmem>>, vector<16x128xf32>
      tpu.vector_store %arg9[%c0_25, %c0_26], %32 {strides = array<i32>} : memref<16x128xf32, #tpu.memory_space<vmem>>, vector<16x128xf32>,
    } else {
    }
    return
  }
  func.func @transform_0(%arg0: i32, %arg1: i32) -> (i32, i32) {
    %c0_i32 = arith.constant 0 : i32
    %c0_i32_0 = arith.constant 0 : i32
    return %arg0, %c0_i32 : i32, i32
  }
  func.func @transform_1(%arg0: i32, %arg1: i32) -> (i32, i32) {
    %c0_i32 = arith.constant 0 : i32
    %c0_i32_0 = arith.constant 0 : i32
    return %c0_i32, %arg1 : i32, i32
  }
  func.func @transform_2(%arg0: i32, %arg1: i32) -> (i32, i32) {
    %c0_i32 = arith.constant 0 : i32
    %c0_i32_0 = arith.constant 0 : i32
    return %c0_i32, %arg1 : i32, i32
  }
  func.func @transform_3(%arg0: i32, %arg1: i32) -> (i32, i32) {
    %c0_i32 = arith.constant 0 : i32
    %c0_i32_0 = arith.constant 0 : i32
    return %c0_i32, %arg1 : i32, i32
  }
  func.func @transform_4(%arg0: i32, %arg1: i32) -> (i32, i32) {
    %c0_i32 = arith.constant 0 : i32
    %c0_i32_0 = arith.constant 0 : i32
    return %c0_i32, %arg1 : i32, i32
  }
  func.func @transform_5(%arg0: i32, %arg1: i32) -> (i32, i32) {
    %c0_i32 = arith.constant 0 : i32
    %c0_i32_0 = arith.constant 0 : i32
    return %arg1, %c0_i32 : i32, i32
  }
  func.func @transform_6(%arg0: i32, %arg1: i32) -> (i32, i32) {
    %c0_i32 = arith.constant 0 : i32
    %c0_i32_0 = arith.constant 0 : i32
    %c0_i32_1 = arith.constant 0 : i32
    return %c0_i32, %c0_i32_0 : i32, i32
  }
  func.func @transform_7(%arg0: i32, %arg1: i32) -> (i32, i32) {
    %c0_i32 = arith.constant 0 : i32
    %c0_i32_0 = arith.constant 0 : i32
    return %arg0, %c0_i32 : i32, i32
  }
}

</mosaic_0001>

<bundles_post_ra>
// kernel: tpu_custom_call.1
= control target key start
LH: loop header
LB: loop body
LE: loop exit
PB: predicated region body
PF: predicated region fallthrough
CT: control target
= control target key end

     0   :  { %12 = vsyncpa [#allocation4], 0  ;;  %s813_s0 = inlined_call_operand.hbm [shape: f32[16,128], index: 0, kind: input, shape index: {}]   ;;  %s814_s1 = inlined_call_operand.hbm [shape: f32[128,256], index: 1, kind: input, shape index: {}]   ;;  %s815_s2 = inlined_call_operand.hbm [shape: f32[128,256], index: 2, kind: input, shape index: {}]   ;;  %s816_s3 = inlined_call_operand.vmem [shape: f32[1,256], index: 3, kind: input, shape index: {}]   ;;  %s817_s4 = inlined_call_operand.hbm [shape: f32[1,256], index: 4, kind: input, shape index: {}]   ;;  %s818_s5 = inlined_call_operand.hbm [shape: f32[256,128], index: 5, kind: input, shape index: {}]   ;;  %s819_s6 = inlined_call_operand.vmem [shape: f32[1,128], index: 6, kind: input, shape index: {}]   ;;  %s820_s7 = inlined_call_operand.hbm [shape: f32[16,128], index: 7, kind: output, shape index: {}]  }
   0x1   :  { %13 = vsyncpa [#allocation7], 0 }
   0x2   :  { %14 = vsyncpa [#allocation10], 0  ;;  %s33_s26 = sshll.u32 %s814_s1, 4  ;;  %s34_s26 = int_to_ptr.hbm [resolvable:$true] %s33_s26 }
   0x3   :  { %15 = vsyncpa [#allocation5], 0  ;;  %s696_s27 = smov [#allocation6]   ;;  %s62_s8 = sshll.u32 %s817_s4, 4  ;;  %s63_s8 = int_to_ptr.hbm [resolvable:$true] %s62_s8 }
   0x4   :  { %s35_s28 = sshll.u32 %s696_s27, 4  ;;  %s697_s9 = smov 256   ;;  %s36_s28 = int_to_ptr.vmem [resolvable:$true] %s35_s28 }
   0x5   :  { %s698_s10 = smov 16   ;;  %s699_s11 = smov [#allocation9]  }
   0x6   :  { %41 = dma.hbm_to_vmem [thread:$0]  %s34_s26, 4096, %s36_s28, [#allocation7], %s697_s9, %s697_s9, %s698_s10  }
   0x7   :  { %s64_s12 = sshll.u32 %s699_s11, 4  ;;  %s20_s15 = sshll.u32 %s813_s0, 4  ;;  %s65_s12 = int_to_ptr.vmem [resolvable:$true] %s64_s12  ;;  %s21_s15 = int_to_ptr.hbm [resolvable:$true] %s20_s15 }
   0x8   :  { %67 = dma.hbm_to_vmem [thread:$0]  %s63_s8, 32, %s65_s12, [#allocation10]  }
   0x9   :  { %s700_s1 = smov [#allocation3]   ;;  %s46_s4 = sshll.u32 %s815_s2, 4  ;;  %s47_s4 = int_to_ptr.hbm [resolvable:$true] %s46_s4 }
   0xa   :  { %s22_s16 = sshll.u32 %s700_s1, 4  ;;  %s701_s19 = smov 128   ;;  %s23_s16 = int_to_ptr.vmem [resolvable:$true] %s22_s16 }
   0xb   :  { %s702_s20 = smov 8   ;;  %s703_s21 = smov [#allocation8]  }
   0xc   :  { %28 = dma.hbm_to_vmem [thread:$0]  %s21_s15, 256, %s23_s16, [#allocation4], %s701_s19, %s701_s19, %s702_s20  }
   0xd   :  { %s48_s22 = sshll.u32 %s703_s21, 4  ;;  %s72_s24 = sshll.u32 %s818_s5, 4  ;;  %s49_s22 = int_to_ptr.vmem [resolvable:$true] %s48_s22  ;;  %s73_s24 = int_to_ptr.hbm [resolvable:$true] %s72_s24 }
   0xe   :  { %54 = dma.hbm_to_vmem [thread:$0]  %s47_s4, 4096, %s49_s22, [#allocation7], %s697_s9, %s697_s9, %s698_s10  }
   0xf   :  { %s704_s25 = smov [#allocation11]  }
  0x10   :  { %s74_s26 = sshll.u32 %s704_s25, 4  ;;  %s75_s26 = int_to_ptr.vmem [resolvable:$true] %s74_s26 }
  0x11   :  { %80 = dma.hbm_to_vmem [thread:$0]  %s73_s24, 4096, %s75_s26, [#allocation10], %s701_s19, %s701_s19, %s702_s20  }
  0x12   :  { %688 = dma.done.wait [#allocation4], 256  }
  0x13   :  { %689 = vsyncadd [#allocation4], 4294967040 }
  0x14   :  { %690 = dma.done.wait [#allocation7], 8192  }
  0x15   :  { %691 = vsyncadd [#allocation7], 4294959104 }
  0x16   :  { %692 = dma.done.wait [#allocation10], 4128  }
  0x17   :  { %693 = vsyncadd [#allocation10], 4294963168  ;;  %v173_v0 = vld [vmem:[#allocation6 + $0xf0] sm:$0xff]  ;;  %v174_v1 = vld [vmem:[#allocation6 + $0xf8] sm:$0xff]  ;;  %s705_s28 = smov [#allocation12]   ;;  %s466_s9 = sshll.u32 %s820_s7, 4  ;;  %s467_s9 = int_to_ptr.hbm [resolvable:$true] %s466_s9 }
  0x18   :  { %v171_v2 = vld [vmem:[#allocation6 + $0xe0] sm:$0xff]  ;;  %181 = vmatpush.msra.mxu0 %v173_v0  ;;  %204 = vmatpush.msra.mxu1 %v174_v1  ;;  %v172_v3 = vld [vmem:[#allocation6 + $0xe8] sm:$0xff]  ;;  %v169_v4 = vld [vmem:[#allocation6 + $0xd0] sm:$0xff]  ;;  %s464_s29 = sshll.u32 %s705_s28, 4  ;;  %s465_s29 = int_to_ptr.vmem [resolvable:$true] %s464_s29 }
  0x19   :  { %v170_v5 = vld [vmem:[#allocation6 + $0xd8] sm:$0xff]  ;;  %v167_v6 = vld [vmem:[#allocation6 + $0xc0] sm:$0xff]  ;;  %v168_v7 = vld [vmem:[#allocation6 + $0xc8] sm:$0xff] }
  0x1a   :  { %182 = vmatpush.msra.mxu0 %v171_v2  ;;  %205 = vmatpush.msra.mxu1 %v172_v3  ;;  %v165_v8 = vld [vmem:[#allocation6 + $0xb0] sm:$0xff]  ;;  %v166_v9 = vld [vmem:[#allocation6 + $0xb8] sm:$0xff]  ;;  %v163_v10 = vld [vmem:[#allocation6 + $0xa0] sm:$0xff] }
  0x1b   :  { %v164_v11 = vld [vmem:[#allocation6 + $0xa8] sm:$0xff]  ;;  %v257_v12 = vld [vmem:[#allocation8 + $0xf0] sm:$0xff]  ;;  %v258_v14 = vld [vmem:[#allocation8 + $0xf8] sm:$0xff] }
  0x1c   :  { %183 = vmatpush.msra.mxu0 %v169_v4  ;;  %206 = vmatpush.msra.mxu1 %v170_v5  ;;  %v161_v13 = vld [vmem:[#allocation6 + $0x90] sm:$0xff]  ;;  %v162_v15 = vld [vmem:[#allocation6 + $0x98] sm:$0xff]  ;;  %v255_v16 = vld [vmem:[#allocation8 + $0xe0] sm:$0xff] }
  0x1d   :  { %265 = vmatpush.msra.mxu2 %v257_v12  ;;  %288 = vmatpush.msra.mxu3 %v258_v14  ;;  %v256_v17 = vld [vmem:[#allocation8 + $0xe8] sm:$0xff]  ;;  %v253_v18 = vld [vmem:[#allocation8 + $0xd0] sm:$0xff]  ;;  %v254_v19 = vld [vmem:[#allocation8 + $0xd8] sm:$0xff] }
  0x1e   :  { %184 = vmatpush.msra.mxu0 %v167_v6  ;;  %207 = vmatpush.msra.mxu1 %v168_v7  ;;  %v159_v20 = vld [vmem:[#allocation6 + $0x80] sm:$0xff]  ;;  %v160_v21 = vld [vmem:[#allocation6 + $0x88] sm:$0xff]  ;;  %v157_v24 = vld [vmem:[#allocation6 + $0x70] sm:$0xff] }
  0x1f   :  { %266 = vmatpush.msra.mxu2 %v255_v16  ;;  %289 = vmatpush.msra.mxu3 %v256_v17  ;;  %v251_v22 = vld [vmem:[#allocation8 + $0xc0] sm:$0xff]  ;;  %v252_v23 = vld [vmem:[#allocation8 + $0xc8] sm:$0xff]  ;;  %v158_v25 = vld [vmem:[#allocation6 + $0x78] sm:$0xff] }
  0x20   :  { %185 = vmatpush.msra.mxu0 %v165_v8  ;;  %208 = vmatpush.msra.mxu1 %v166_v9  ;;  %v249_v26 = vld [vmem:[#allocation8 + $0xb0] sm:$0xff]  ;;  %v250_v27 = vld [vmem:[#allocation8 + $0xb8] sm:$0xff]  ;;  %v155_v28 = vld [vmem:[#allocation6 + $0x60] sm:$0xff] }
  0x21   :  { %267 = vmatpush.msra.mxu2 %v253_v18  ;;  %290 = vmatpush.msra.mxu3 %v254_v19  ;;  %v156_v29 = vld [vmem:[#allocation6 + $0x68] sm:$0xff]  ;;  %v247_v30 = vld [vmem:[#allocation8 + $0xa0] sm:$0xff]  ;;  %v153_v32 = vld [vmem:[#allocation6 + $0x50] sm:$0xff] }
  0x22   :  { %186 = vmatpush.msra.mxu0 %v163_v10  ;;  %209 = vmatpush.msra.mxu1 %v164_v11  ;;  %v248_v31 = vld [vmem:[#allocation8 + $0xa8] sm:$0xff]  ;;  %v154_v33 = vld [vmem:[#allocation6 + $0x58] sm:$0xff]  ;;  %v245_v34 = vld [vmem:[#allocation8 + $0x90] sm:$0xff] }
  0x23   :  { %268 = vmatpush.msra.mxu2 %v251_v22  ;;  %291 = vmatpush.msra.mxu3 %v252_v23  ;;  %v246_v35 = vld [vmem:[#allocation8 + $0x98] sm:$0xff]  ;;  %v151_v36 = vld [vmem:[#allocation6 + $0x40] sm:$0xff]  ;;  %v152_v37 = vld [vmem:[#allocation6 + $0x48] sm:$0xff] }
  0x24   :  { %187 = vmatpush.msra.mxu0 %v161_v13  ;;  %210 = vmatpush.msra.mxu1 %v162_v15  ;;  %v243_v38 = vld [vmem:[#allocation8 + $0x80] sm:$0xff]  ;;  %v244_v39 = vld [vmem:[#allocation8 + $0x88] sm:$0xff]  ;;  %v149_v40 = vld [vmem:[#allocation6 + $0x30] sm:$0xff] }
  0x25   :  { %269 = vmatpush.msra.mxu2 %v249_v26  ;;  %292 = vmatpush.msra.mxu3 %v250_v27  ;;  %v150_v41 = vld [vmem:[#allocation6 + $0x38] sm:$0xff]  ;;  %v241_v42 = vld [vmem:[#allocation8 + $0x70] sm:$0xff]  ;;  %v147_v44 = vld [vmem:[#allocation6 + $0x20] sm:$0xff] }
  0x26   :  { %188 = vmatpush.msra.mxu0 %v159_v20  ;;  %211 = vmatpush.msra.mxu1 %v160_v21  ;;  %v242_v43 = vld [vmem:[#allocation8 + $0x78] sm:$0xff]  ;;  %v148_v45 = vld [vmem:[#allocation6 + $0x28] sm:$0xff]  ;;  %v239_v46 = vld [vmem:[#allocation8 + $0x60] sm:$0xff] }
  0x27   :  { %270 = vmatpush.msra.mxu2 %v247_v30  ;;  %293 = vmatpush.msra.mxu3 %v248_v31  ;;  %v240_v47 = vld [vmem:[#allocation8 + $0x68] sm:$0xff]  ;;  %v145_v48 = vld [vmem:[#allocation6 + $0x10] sm:$0xff]  ;;  %v146_v49 = vld [vmem:[#allocation6 + $0x18] sm:$0xff] }
  0x28   :  { %189 = vmatpush.msra.mxu0 %v157_v24  ;;  %212 = vmatpush.msra.mxu1 %v158_v25  ;;  %v237_v50 = vld [vmem:[#allocation8 + $0x50] sm:$0xff]  ;;  %v238_v51 = vld [vmem:[#allocation8 + $0x58] sm:$0xff]  ;;  %v143_v52 = vld [vmem:[#allocation6] sm:$0xff] }
  0x29   :  { %271 = vmatpush.msra.mxu2 %v245_v34  ;;  %294 = vmatpush.msra.mxu3 %v246_v35  ;;  %v144_v53 = vld [vmem:[#allocation6 + $0x8] sm:$0xff]  ;;  %v109_v54 = vld [vmem:[#allocation3] sm:$0xff]  ;;  %v235_v55 = vld [vmem:[#allocation8 + $0x40] sm:$0xff] }
  0x2a   :  { %190 = vmatpush.msra.mxu0 %v155_v28  ;;  %213 = vmatpush.msra.mxu1 %v156_v29  ;;  %v236_v56 = vld [vmem:[#allocation8 + $0x48] sm:$0xff]  ;;  %v233_v57 = vld [vmem:[#allocation8 + $0x30] sm:$0xff]  ;;  %v234_v58 = vld [vmem:[#allocation8 + $0x38] sm:$0xff] }
  0x2b   :  { %272 = vmatpush.msra.mxu2 %v243_v38  ;;  %295 = vmatpush.msra.mxu3 %v244_v39  ;;  %v231_v59 = vld [vmem:[#allocation8 + $0x20] sm:$0xff]  ;;  %v232_v60 = vld [vmem:[#allocation8 + $0x28] sm:$0xff]  ;;  %v229_v61 = vld [vmem:[#allocation8 + $0x10] sm:$0xff] }
  0x2c   :  { %191 = vmatpush.msra.mxu0 %v153_v32  ;;  %214 = vmatpush.msra.mxu1 %v154_v33  ;;  %v230_v62 = vld [vmem:[#allocation8 + $0x18] sm:$0xff]  ;;  %v227_v0 = vld [vmem:[#allocation8] sm:$0xff]  ;;  %v228_v1 = vld [vmem:[#allocation8 + $0x8] sm:$0xff] }
  0x2d   :  { %273 = vmatpush.msra.mxu2 %v241_v42  ;;  %296 = vmatpush.msra.mxu3 %v242_v43  ;;  %v110_v63 = vld [vmem:[#allocation3 + $0x8] sm:$0xff]  ;;  %v124_v6 = vld [vmem:[#allocation11 + $0x68] sm:$0xff]  ;;  %v123_v8 = vld [vmem:[#allocation11 + $0x60] sm:$0xff] }
  0x2e   :  { %192 = vmatpush.msra.mxu0 %v151_v36  ;;  %215 = vmatpush.msra.mxu1 %v152_v37  ;;  %v126_v2 = vld [vmem:[#allocation11 + $0x78] sm:$0xff]  ;;  %v125_v4 = vld [vmem:[#allocation11 + $0x70] sm:$0xff]  ;;  %v140_v7 = vld [vmem:[#allocation11 + $0xe8] sm:$0xff] }
  0x2f   :  { %274 = vmatpush.msra.mxu2 %v239_v46  ;;  %297 = vmatpush.msra.mxu3 %v240_v47  ;;  %v142_v3 = vld [vmem:[#allocation11 + $0xf8] sm:$0xff]  ;;  %v141_v5 = vld [vmem:[#allocation11 + $0xf0] sm:$0xff]  ;;  %v139_v9 = vld [vmem:[#allocation11 + $0xe0] sm:$0xff] }
  0x30   :  { %193 = vmatpush.msra.mxu0 %v149_v40  ;;  %216 = vmatpush.msra.mxu1 %v150_v41  ;;  %v122_v10 = vld [vmem:[#allocation11 + $0x58] sm:$0xff]  ;;  %v121_v12 = vld [vmem:[#allocation11 + $0x50] sm:$0xff]  ;;  %v120_v14 = vld [vmem:[#allocation11 + $0x48] sm:$0xff] }
  0x31   :  { %275 = vmatpush.msra.mxu2 %v237_v50  ;;  %298 = vmatpush.msra.mxu3 %v238_v51  ;;  %v138_v11 = vld [vmem:[#allocation11 + $0xd8] sm:$0xff]  ;;  %v137_v13 = vld [vmem:[#allocation11 + $0xd0] sm:$0xff]  ;;  %v136_v15 = vld [vmem:[#allocation11 + $0xc8] sm:$0xff] }
  0x32   :  { %194 = vmatpush.msra.mxu0 %v147_v44  ;;  %217 = vmatpush.msra.mxu1 %v148_v45  ;;  %v119_v16 = vld [vmem:[#allocation11 + $0x40] sm:$0xff]  ;;  %v118_v18 = vld [vmem:[#allocation11 + $0x38] sm:$0xff]  ;;  %v117_v20 = vld [vmem:[#allocation11 + $0x30] sm:$0xff] }
  0x33   :  { %276 = vmatpush.msra.mxu2 %v235_v55  ;;  %299 = vmatpush.msra.mxu3 %v236_v56  ;;  %v135_v17 = vld [vmem:[#allocation11 + $0xc0] sm:$0xff]  ;;  %v134_v19 = vld [vmem:[#allocation11 + $0xb8] sm:$0xff]  ;;  %v133_v21 = vld [vmem:[#allocation11 + $0xb0] sm:$0xff] }
  0x34   :  { %195 = vmatpush.msra.mxu0 %v145_v48  ;;  %218 = vmatpush.msra.mxu1 %v146_v49  ;;  %v175_v22 = vld [vmem:[%s816_s3] sm:$0x3]  ;;  %v115_v27 = vld [vmem:[#allocation11 + $0x20] sm:$0xff]  ;;  %v114_v29 = vld [vmem:[#allocation11 + $0x18] sm:$0xff] }
  0x35   :  { %277 = vmatpush.msra.mxu2 %v233_v57  ;;  %300 = vmatpush.msra.mxu3 %v234_v58  ;;  %v116_v23 = vld [vmem:[#allocation11 + $0x28] sm:$0xff]  ;;  %v177_v25 = vperm.slane %v175_v22, 0  ;;  %v178_v26 = vperm.slane %v175_v22, 1  ;;  %v131_v28 = vld [vmem:[#allocation11 + $0xa0] sm:$0xff]  ;;  %v130_v30 = vld [vmem:[#allocation11 + $0x98] sm:$0xff] }
  0x36   :  { %196 = vmatpush.msra.mxu0 %v143_v52  ;;  %219 = vmatpush.msra.mxu1 %v144_v53  ;;  %v132_v24 = vld [vmem:[#allocation11 + $0xa8] sm:$0xff]  ;;  %v113_v35 = vld [vmem:[#allocation11 + $0x10] sm:$0xff]  ;;  %v111_v41 = vld [vmem:[#allocation11] sm:$0xff] }
  0x37   :  { %197 = vmatmul.f32.vlgmr.msra.gmra.mxu0 %v109_v54  ;;  %220 = vmatmul.f32.vlgmr.msra.gmra.mxu1 %v109_v54  ;;  %v129_v36 = vld [vmem:[#allocation11 + $0x90] sm:$0xff]  ;;  %v112_v39 = vld [vmem:[#allocation11 + $0x8] sm:$0xff]  ;;  %v127_v42 = vld [vmem:[#allocation11 + $0x80] sm:$0xff] }
  0x38   :  { %278 = vmatpush.msra.mxu2 %v231_v59  ;;  %301 = vmatpush.msra.mxu3 %v232_v60  ;;  %v128_v40 = vld [vmem:[#allocation11 + $0x88] sm:$0xff]  ;;  %v784_v58 = vld [vmem:[#allocation9] sm:$0x3] }
  0x39   :  { %397 = vmatpush.msrb.mxu0 %v126_v2  ;;  %420 = vmatpush.msrb.mxu1 %v142_v3 }
  0x3a   :  { %279 = vmatpush.msra.mxu2 %v229_v61  ;;  %302 = vmatpush.msra.mxu3 %v230_v62 }
  0x3b   :  { %398 = vmatpush.msrb.mxu0 %v125_v4  ;;  %421 = vmatpush.msrb.mxu1 %v141_v5 }
  0x3c   :  { %280 = vmatpush.msra.mxu2 %v227_v0  ;;  %303 = vmatpush.msra.mxu3 %v228_v1 }
  0x3d   :  { %281 = vmatmul.f32.vlgmr.msra.gmra.mxu2 %v109_v54  ;;  %304 = vmatmul.f32.vlgmr.msra.gmra.mxu3 %v109_v54 }
  0x3e   :  { %485 = vmatpush.msrb.mxu2 %v126_v2  ;;  %501 = vmatpush.msrb.mxu3 %v142_v3  ;;  %v261_v2 = vperm.slane %v784_v58, 0 }
  0x3f   :  { %200 = vmatmul.f32.gmra.mxu0 %v110_v63  ;;  %223 = vmatmul.f32.gmra.mxu1 %v110_v63 }
  0x40   :  { %486 = vmatpush.msrb.mxu2 %v125_v4  ;;  %502 = vmatpush.msrb.mxu3 %v141_v5 }
  0x41   :  { %399 = vmatpush.msrb.mxu0 %v124_v6  ;;  %422 = vmatpush.msrb.mxu1 %v140_v7 }
  0x42   :  { %487 = vmatpush.msrb.mxu2 %v124_v6  ;;  %503 = vmatpush.msrb.mxu3 %v140_v7 }
  0x43   :  { %400 = vmatpush.msrb.mxu0 %v123_v8  ;;  %423 = vmatpush.msrb.mxu1 %v139_v9 }
  0x44   :  { %488 = vmatpush.msrb.mxu2 %v123_v8  ;;  %504 = vmatpush.msrb.mxu3 %v139_v9  ;;  %v262_v8 = vperm.slane %v784_v58, 1 }
  0x45   :  { %284 = vmatmul.f32.gmra.mxu2 %v110_v63  ;;  %307 = vmatmul.f32.gmra.mxu3 %v110_v63 }
  0x46   :  { %401 = vmatpush.msrb.mxu0 %v122_v10  ;;  %424 = vmatpush.msrb.mxu1 %v138_v11 }
  0x47   :  { %489 = vmatpush.msrb.mxu2 %v122_v10  ;;  %505 = vmatpush.msrb.mxu3 %v138_v11 }
  0x48   :  { %402 = vmatpush.msrb.mxu0 %v121_v12  ;;  %425 = vmatpush.msrb.mxu1 %v137_v13 }
  0x49   :  { %490 = vmatpush.msrb.mxu2 %v121_v12  ;;  %506 = vmatpush.msrb.mxu3 %v137_v13 }
  0x4a   :  { %403 = vmatpush.msrb.mxu0 %v120_v14  ;;  %426 = vmatpush.msrb.mxu1 %v136_v15 }
  0x4b   :  { %491 = vmatpush.msrb.mxu2 %v120_v14  ;;  %507 = vmatpush.msrb.mxu3 %v136_v15 }
  0x4c   :  { %404 = vmatpush.msrb.mxu0 %v119_v16  ;;  %427 = vmatpush.msrb.mxu1 %v135_v17 }
  0x4d   :  { %492 = vmatpush.msrb.mxu2 %v119_v16  ;;  %508 = vmatpush.msrb.mxu3 %v135_v17 }
  0x4e   :  { %405 = vmatpush.msrb.mxu0 %v118_v18  ;;  %428 = vmatpush.msrb.mxu1 %v134_v19 }
  0x4f   :  { %493 = vmatpush.msrb.mxu2 %v118_v18  ;;  %509 = vmatpush.msrb.mxu3 %v134_v19 }
  0x50   :  { %406 = vmatpush.msrb.mxu0 %v117_v20  ;;  %429 = vmatpush.msrb.mxu1 %v133_v21 }
  0x51   :  { %494 = vmatpush.msrb.mxu2 %v117_v20  ;;  %510 = vmatpush.msrb.mxu3 %v133_v21 }
  0x52   :  { %407 = vmatpush.msrb.mxu0 %v116_v23  ;;  %430 = vmatpush.msrb.mxu1 %v132_v24 }
  0x53   :  { %495 = vmatpush.msrb.mxu2 %v116_v23  ;;  %511 = vmatpush.msrb.mxu3 %v132_v24 }
  0x54   :  { %408 = vmatpush.msrb.mxu0 %v115_v27  ;;  %431 = vmatpush.msrb.mxu1 %v131_v28 }
  0x55   :  { %496 = vmatpush.msrb.mxu2 %v115_v27  ;;  %512 = vmatpush.msrb.mxu3 %v131_v28 }
  0x56   :  { %409 = vmatpush.msrb.mxu0 %v114_v29  ;;  %432 = vmatpush.msrb.mxu1 %v130_v30 }
  0x57   :  { %497 = vmatpush.msrb.mxu2 %v114_v29  ;;  %513 = vmatpush.msrb.mxu3 %v130_v30 }
  0x58   :  { %410 = vmatpush.msrb.mxu0 %v113_v35  ;;  %433 = vmatpush.msrb.mxu1 %v129_v36 }
  0x59   :  { %498 = vmatpush.msrb.mxu2 %v113_v35  ;;  %514 = vmatpush.msrb.mxu3 %v129_v36 }
  0x5a   :  { %411 = vmatpush.msrb.mxu0 %v112_v39  ;;  %434 = vmatpush.msrb.mxu1 %v128_v40 }
  0x5b   :  { %499 = vmatpush.msrb.mxu2 %v112_v39  ;;  %515 = vmatpush.msrb.mxu3 %v128_v40 }
  0x5c   :  { %412 = vmatpush.msrb.mxu0 %v111_v41  ;;  %435 = vmatpush.msrb.mxu1 %v127_v42 }
  0x5d   :  { %500 = vmatpush.msrb.mxu2 %v111_v41  ;;  %516 = vmatpush.msrb.mxu3 %v127_v42 }
  0xb4   :  { %v198_v31 = vpop.f32.mrf.mxu0  ;;  %v221_v32 = vpop.f32.mrf.mxu1 }
  0xb5   :  { %v770_v33 = vadd.f32 %v198_v31, %v177_v25  ;;  %v772_v34 = vadd.f32 %v221_v32, %v178_v26 }
  0xb7   :  { %v481_v37 = vmul.f32 -1.442695, %v770_v33  ;;  %v482_v38 = vmul.f32 -1.442695, %v772_v34 }
  0xb9   :  { %528 = vpow2.f32 %v481_v37 }
  0xba   :  { %530 = vpow2.f32 %v482_v38 }
  0xbc   :  { %v201_v43 = vpop.f32.mrf.mxu0  ;;  %v224_v44 = vpop.f32.mrf.mxu1 }
  0xbd   :  { %v776_v45 = vadd.f32 %v201_v43, %v177_v25  ;;  %v778_v46 = vadd.f32 %v224_v44, %v178_v26 }
  0xbf   :  { %v529_v47 = vpop.eup %528  ;;  %v483_v48 = vmul.f32 -1.442695, %v776_v45  ;;  %v484_v51 = vmul.f32 -1.442695, %v778_v46 }
  0xc0   :  { %v531_v49 = vpop.eup %530  ;;  %v323_v50 = vadd.f32 1.0, %v529_v47  ;;  %v282_v3 = vpop.f32.mrf.mxu2 }
  0xc1   :  { %v324_v52 = vadd.f32 1.0, %v531_v49  ;;  %532 = vpow2.f32 %v483_v48  ;;  %v305_v10 = vpop.f32.mrf.mxu3  ;;  %v283_v17 = vadd.f32 %v282_v3, %v261_v2 }
  0xc2   :  { %534 = vrcp.f32 %v323_v50  ;;  %v336_v63 = vand.u32 2147483647, %v323_v50  ;;  %v338_v0 = vand.u32 2147483648, %v323_v50  ;;  %vm332_vm2 = vweird.f32 %v323_v50 }
  0xc3   :  { %536 = vrcp.f32 %v324_v52  ;;  %v353_v5 = vand.u32 2147483648, %v324_v52  ;;  %v351_v7 = vand.u32 2147483647, %v324_v52  ;;  %vm347_vm5 = vweird.f32 %v324_v52 }
  0xc4   :  { %538 = vpow2.f32 %v484_v51  ;;  %vm337_vm4 = vcmp.eq.f32.partialorder %v336_v63, 8.507059e+37  ;;  %v339_v12 = vor.u32 1.1754944e-38, %v338_v0  ;;  %v306_v20 = vadd.f32 %v305_v10, %v262_v8 }
  0xc5   :  { %v354_v15 = vor.u32 1.1754944e-38, %v353_v5  ;;  %vm352_vm7 = vcmp.eq.f32.partialorder %v351_v7, 8.507059e+37 }
  0xc7   :  { %v533_v53 = vpop.eup %532 }
  0xc8   :  { %v535_v54 = vpop.eup %534  ;;  %v782_v55 = vadd.f32 1.0, %v533_v53  ;;  %v285_v35 = vpop.f32.mrf.mxu2 }
  0xc9   :  { %v537_v56 = vpop.eup %536  ;;  %v328_v57 = vmul.f32 %v535_v54, %v323_v50  ;;  %vm333_vm0 = vweird.f32 %v535_v54  ;;  %v286_v40 = vadd.f32 %v285_v35, %v261_v2  ;;  %v308_v41 = vpop.f32.mrf.mxu3 }
  0xca   :  { %v539_v59 = vpop.eup %538  ;;  %v343_v60 = vmul.f32 %v537_v56, %v324_v52  ;;  %540 = vrcp.f32 %v782_v55  ;;  %vm348_vm1 = vweird.f32 %v537_v56  ;;  %vm334_vm3 = vmor %vm332_vm2, %vm333_vm0  ;;  %v368_v26 = vand.u32 2147483648, %v782_v55 }
  0xcb   :  { %v329_v61 = vsub.f32 1.0, %v328_v57  ;;  %v787_v62 = vadd.f32 1.0, %v539_v59  ;;  %vm349_vm6 = vmor %vm347_vm5, %vm348_vm1  ;;  %v366_v29 = vand.u32 2147483647, %v782_v55  ;;  %vm362_vm9 = vweird.f32 %v782_v55 }
  0xcc   :  { %v344_v1 = vsub.f32 1.0, %v343_v60  ;;  %v309_v49 = vadd.f32 %v308_v41, %v262_v8 }
  0xcd   :  { %v330_v4 = vmul.f32 %v535_v54, %v329_v61  ;;  %542 = vrcp.f32 %v787_v62  ;;  %v381_v38 = vand.u32 2147483647, %v787_v62  ;;  %vm367_vm12 = vcmp.eq.f32.partialorder %v366_v29, 8.507059e+37 }
  0xce   :  { %v345_v6 = vmul.f32 %v537_v56, %v344_v1  ;;  %vm377_vm13 = vweird.f32 %v787_v62 }
  0xcf   :  { %v331_v9 = vadd.f32 %v535_v54, %v330_v4  ;;  %vm382_vm15 = vcmp.eq.f32.partialorder %v381_v38, 8.507059e+37 }
  0xd0   :  { %v541_v11 = vpop.eup %540  ;;  %v346_v13 = vadd.f32 %v537_v56, %v345_v6 }
  0xd1   :  { %v335_v14 = vsel %vm334_vm3, %v535_v54, %v331_v9  ;;  %v358_v16 = vmul.f32 %v541_v11, %v782_v55  ;;  %vm363_vm8 = vweird.f32 %v541_v11  ;;  %v527_v55 = vld [vmem:[%s819_s6] ss:$0 sm:$0xff] }
  0xd2   :  { %v340_v18 = vsel %vm337_vm4, %v339_v12, %v335_v14  ;;  %v350_v19 = vsel %vm349_vm6, %v537_v56, %v346_v13  ;;  %vm364_vm10 = vmor %vm362_vm9, %vm363_vm8 }
  0xd3   :  { %v543_v21 = vpop.eup %542  ;;  %v387_v22 = vmul.f32 %v340_v18, %v770_v33  ;;  %v355_v23 = vsel %vm352_vm7, %v354_v15, %v350_v19  ;;  %v359_v24 = vsub.f32 1.0, %v358_v16  ;;  %v383_v33 = vand.u32 2147483648, %v787_v62 }
  0xd4   :  { %v388_v25 = vmul.f32 %v355_v23, %v772_v34  ;;  %v373_v27 = vmul.f32 %v543_v21, %v787_v62  ;;  %v369_v34 = vor.u32 1.1754944e-38, %v368_v26  ;;  %vm378_vm11 = vweird.f32 %v543_v21 }
  0xd5   :  { %v360_v28 = vmul.f32 %v541_v11, %v359_v24  ;;  %v391_v30 = vmul.f32 %v387_v22, %v283_v17  ;;  %vm379_vm14 = vmor %vm377_vm13, %vm378_vm11  ;;  %v384_v47 = vor.u32 1.1754944e-38, %v383_v33 }
  0xd6   :  { %v374_v31 = vsub.f32 1.0, %v373_v27  ;;  %v392_v32 = vmul.f32 %v388_v25, %v306_v20 }
  0xd7   :  { %v361_v36 = vadd.f32 %v541_v11, %v360_v28  ;;  %413 = vmatmul.f32.vlgmr.msrb.gmra.mxu0 %v391_v30 }
  0xd8   :  { %v375_v37 = vmul.f32 %v543_v21, %v374_v31  ;;  %436 = vmatmul.f32.vlgmr.msrb.gmra.mxu1 %v392_v32 }
  0xd9   :  { %v365_v39 = vsel %vm364_vm10, %v541_v11, %v361_v36 }
  0xda   :  { %v370_v42 = vsel %vm367_vm12, %v369_v34, %v365_v39  ;;  %v376_v43 = vadd.f32 %v543_v21, %v375_v37 }
  0xdb   :  { %v389_v44 = vmul.f32 %v370_v42, %v776_v45 }
  0xdc   :  { %v380_v48 = vsel %vm379_vm14, %v543_v21, %v376_v43 }
  0xdd   :  { %v385_v50 = vsel %vm382_vm15, %v384_v47, %v380_v48  ;;  %v393_v51 = vmul.f32 %v389_v44, %v286_v40 }
  0xde   :  { %v390_v52 = vmul.f32 %v385_v50, %v778_v46 }
  0xdf   :  { %416 = vmatmul.f32.vlgmr.msrb.gmra.mxu2 %v393_v51 }
  0xe0   :  { %v394_v53 = vmul.f32 %v390_v52, %v309_v49 }
  0xe2   :  { %439 = vmatmul.f32.vlgmr.msrb.gmra.mxu3 %v394_v53 }
 0x154   :  { %v414_v54 = vpop.f32.mrf.mxu0 }
 0x155   :  { %v437_v56 = vpop.f32.mrf.mxu1 }
 0x156   :  { %v438_v57 = vadd.f32 %v437_v56, %v414_v54 }
 0x158   :  { %v456_v45 = vadd.f32 %v527_v55, %v438_v57 }
 0x15a   :  { %458 = vst [vmem:[#allocation12] sm:$0xff] %v456_v45 }
 0x162   :  { %v417_v58 = vpop.f32.mrf.mxu2 }
 0x165   :  { %v440_v59 = vpop.f32.mrf.mxu3 }
 0x166   :  { %v441_v46 = vadd.f32 %v440_v59, %v417_v58 }
 0x168   :  { %v457_v60 = vadd.f32 %v527_v55, %v441_v46 }
 0x16a   :  { %459 = vst [vmem:[#allocation12 + $0x8] sm:$0xff] %v457_v60 }
 0x16b   :  { %472 = dma.vmem_to_hbm [thread:$0]  %s465_s29, 256, %s467_s9, [#allocation5], %s701_s19, %s701_s19, %s702_s20  }
 0x16c   :  { %694 = dma.done.wait [#allocation5], 256  }
 0x16d   :  { %695 = vsyncadd [#allocation5], 4294967040 }
 0x16e   :  { %477 = vsyncpa [#allocation4], 1 }
 0x16f   :  { %478 = vsyncpa [#allocation7], 1 }
 0x170   :  { %479 = vsyncpa [#allocation10], 1 }
 0x171   :  { %480 = vsyncpa [#allocation5], 1 }

// kernel: tpu_custom_call.1
= control target key start
LH: loop header
LB: loop body
LE: loop exit
PB: predicated region body
PF: predicated region fallthrough
CT: control target
= control target key end

     0   :  { %12 = vsyncpa [#allocation4], 0  ;;  %s813_s0 = inlined_call_operand.hbm [shape: f32[16,128], index: 0, kind: input, shape index: {}]   ;;  %s814_s1 = inlined_call_operand.hbm [shape: f32[128,256], index: 1, kind: input, shape index: {}]   ;;  %s815_s2 = inlined_call_operand.hbm [shape: f32[128,256], index: 2, kind: input, shape index: {}]   ;;  %s816_s3 = inlined_call_operand.vmem [shape: f32[1,256], index: 3, kind: input, shape index: {}]   ;;  %s817_s4 = inlined_call_operand.hbm [shape: f32[1,256], index: 4, kind: input, shape index: {}]   ;;  %s818_s5 = inlined_call_operand.hbm [shape: f32[256,128], index: 5, kind: input, shape index: {}]   ;;  %s819_s6 = inlined_call_operand.vmem [shape: f32[1,128], index: 6, kind: input, shape index: {}]   ;;  %s820_s7 = inlined_call_operand.hbm [shape: f32[16,128], index: 7, kind: output, shape index: {}]  }
   0x1   :  { %13 = vsyncpa [#allocation7], 0 }
   0x2   :  { %14 = vsyncpa [#allocation10], 0  ;;  %s33_s26 = sshll.u32 %s814_s1, 4  ;;  %s34_s26 = int_to_ptr.hbm [resolvable:$true] %s33_s26 }
   0x3   :  { %15 = vsyncpa [#allocation5], 0  ;;  %s696_s27 = smov [#allocation6]   ;;  %s62_s8 = sshll.u32 %s817_s4, 4  ;;  %s63_s8 = int_to_ptr.hbm [resolvable:$true] %s62_s8 }
   0x4   :  { %s35_s28 = sshll.u32 %s696_s27, 4  ;;  %s697_s9 = smov 256   ;;  %s36_s28 = int_to_ptr.vmem [resolvable:$true] %s35_s28 }
   0x5   :  { %s698_s10 = smov 16   ;;  %s699_s11 = smov [#allocation9]  }
   0x6   :  { %41 = dma.hbm_to_vmem [thread:$0]  %s34_s26, 4096, %s36_s28, [#allocation7], %s697_s9, %s697_s9, %s698_s10  }
   0x7   :  { %s64_s12 = sshll.u32 %s699_s11, 4  ;;  %s20_s15 = sshll.u32 %s813_s0, 4  ;;  %s65_s12 = int_to_ptr.vmem [resolvable:$true] %s64_s12  ;;  %s21_s15 = int_to_ptr.hbm [resolvable:$true] %s20_s15 }
   0x8   :  { %67 = dma.hbm_to_vmem [thread:$0]  %s63_s8, 32, %s65_s12, [#allocation10]  }
   0x9   :  { %s700_s1 = smov [#allocation3]   ;;  %s46_s4 = sshll.u32 %s815_s2, 4  ;;  %s47_s4 = int_to_ptr.hbm [resolvable:$true] %s46_s4 }
   0xa   :  { %s22_s16 = sshll.u32 %s700_s1, 4  ;;  %s701_s19 = smov 128   ;;  %s23_s16 = int_to_ptr.vmem [resolvable:$true] %s22_s16 }
   0xb   :  { %s702_s20 = smov 8   ;;  %s703_s21 = smov [#allocation8]  }
   0xc   :  { %28 = dma.hbm_to_vmem [thread:$0]  %s21_s15, 256, %s23_s16, [#allocation4], %s701_s19, %s701_s19, %s702_s20  }
   0xd   :  { %s48_s22 = sshll.u32 %s703_s21, 4  ;;  %s72_s24 = sshll.u32 %s818_s5, 4  ;;  %s49_s22 = int_to_ptr.vmem [resolvable:$true] %s48_s22  ;;  %s73_s24 = int_to_ptr.hbm [resolvable:$true] %s72_s24 }
   0xe   :  { %54 = dma.hbm_to_vmem [thread:$0]  %s47_s4, 4096, %s49_s22, [#allocation7], %s697_s9, %s697_s9, %s698_s10  }
   0xf   :  { %s704_s25 = smov [#allocation11]  }
  0x10   :  { %s74_s26 = sshll.u32 %s704_s25, 4  ;;  %s75_s26 = int_to_ptr.vmem [resolvable:$true] %s74_s26 }
  0x11   :  { %80 = dma.hbm_to_vmem [thread:$0]  %s73_s24, 4096, %s75_s26, [#allocation10], %s701_s19, %s701_s19, %s702_s20  }
  0x12   :  { %688 = dma.done.wait [#allocation4], 256  }
  0x13   :  { %689 = vsyncadd [#allocation4], 4294967040 }
  0x14   :  { %690 = dma.done.wait [#allocation7], 8192  }
  0x15   :  { %691 = vsyncadd [#allocation7], 4294959104 }
  0x16   :  { %692 = dma.done.wait [#allocation10], 4128  }
  0x17   :  { %693 = vsyncadd [#allocation10], 4294963168  ;;  %v173_v0 = vld [vmem:[#allocation6 + $0xf0] sm:$0xff]  ;;  %v174_v1 = vld [vmem:[#allocation6 + $0xf8] sm:$0xff]  ;;  %s705_s28 = smov [#allocation12]   ;;  %s466_s9 = sshll.u32 %s820_s7, 4  ;;  %s467_s9 = int_to_ptr.hbm [resolvable:$true] %s466_s9 }
  0x18   :  { %v171_v2 = vld [vmem:[#allocation6 + $0xe0] sm:$0xff]  ;;  %181 = vmatpush.msra.mxu0 %v173_v0  ;;  %204 = vmatpush.msra.mxu1 %v174_v1  ;;  %v172_v3 = vld [vmem:[#allocation6 + $0xe8] sm:$0xff]  ;;  %v169_v4 = vld [vmem:[#allocation6 + $0xd0] sm:$0xff]  ;;  %s464_s29 = sshll.u32 %s705_s28, 4  ;;  %s465_s29 = int_to_ptr.vmem [resolvable:$true] %s464_s29 }
  0x19   :  { %v170_v5 = vld [vmem:[#allocation6 + $0xd8] sm:$0xff]  ;;  %v167_v6 = vld [vmem:[#allocation6 + $0xc0] sm:$0xff]  ;;  %v168_v7 = vld [vmem:[#allocation6 + $0xc8] sm:$0xff] }
  0x1a   :  { %182 = vmatpush.msra.mxu0 %v171_v2  ;;  %205 = vmatpush.msra.mxu1 %v172_v3  ;;  %v165_v8 = vld [vmem:[#allocation6 + $0xb0] sm:$0xff]  ;;  %v166_v9 = vld [vmem:[#allocation6 + $0xb8] sm:$0xff]  ;;  %v163_v10 = vld [vmem:[#allocation6 + $0xa0] sm:$0xff] }
  0x1b   :  { %v164_v11 = vld [vmem:[#allocation6 + $0xa8] sm:$0xff]  ;;  %v257_v12 = vld [vmem:[#allocation8 + $0xf0] sm:$0xff]  ;;  %v258_v14 = vld [vmem:[#allocation8 + $0xf8] sm:$0xff] }
  0x1c   :  { %183 = vmatpush.msra.mxu0 %v169_v4  ;;  %206 = vmatpush.msra.mxu1 %v170_v5  ;;  %v161_v13 = vld [vmem:[#allocation6 + $0x90] sm:$0xff]  ;;  %v162_v15 = vld [vmem:[#allocation6 + $0x98] sm:$0xff]  ;;  %v255_v16 = vld [vmem:[#allocation8 + $0xe0] sm:$0xff] }
  0x1d   :  { %265 = vmatpush.msra.mxu2 %v257_v12  ;;  %288 = vmatpush.msra.mxu3 %v258_v14  ;;  %v256_v17 = vld [vmem:[#allocation8 + $0xe8] sm:$0xff]  ;;  %v253_v18 = vld [vmem:[#allocation8 + $0xd0] sm:$0xff]  ;;  %v254_v19 = vld [vmem:[#allocation8 + $0xd8] sm:$0xff] }
  0x1e   :  { %184 = vmatpush.msra.mxu0 %v167_v6  ;;  %207 = vmatpush.msra.mxu1 %v168_v7  ;;  %v159_v20 = vld [vmem:[#allocation6 + $0x80] sm:$0xff]  ;;  %v160_v21 = vld [vmem:[#allocation6 + $0x88] sm:$0xff]  ;;  %v157_v24 = vld [vmem:[#allocation6 + $0x70] sm:$0xff] }
  0x1f   :  { %266 = vmatpush.msra.mxu2 %v255_v16  ;;  %289 = vmatpush.msra.mxu3 %v256_v17  ;;  %v251_v22 = vld [vmem:[#allocation8 + $0xc0] sm:$0xff]  ;;  %v252_v23 = vld [vmem:[#allocation8 + $0xc8] sm:$0xff]  ;;  %v158_v25 = vld [vmem:[#allocation6 + $0x78] sm:$0xff] }
  0x20   :  { %185 = vmatpush.msra.mxu0 %v165_v8  ;;  %208 = vmatpush.msra.mxu1 %v166_v9  ;;  %v249_v26 = vld [vmem:[#allocation8 + $0xb0] sm:$0xff]  ;;  %v250_v27 = vld [vmem:[#allocation8 + $0xb8] sm:$0xff]  ;;  %v155_v28 = vld [vmem:[#allocation6 + $0x60] sm:$0xff] }
  0x21   :  { %267 = vmatpush.msra.mxu2 %v253_v18  ;;  %290 = vmatpush.msra.mxu3 %v254_v19  ;;  %v156_v29 = vld [vmem:[#allocation6 + $0x68] sm:$0xff]  ;;  %v247_v30 = vld [vmem:[#allocation8 + $0xa0] sm:$0xff]  ;;  %v153_v32 = vld [vmem:[#allocation6 + $0x50] sm:$0xff] }
  0x22   :  { %186 = vmatpush.msra.mxu0 %v163_v10  ;;  %209 = vmatpush.msra.mxu1 %v164_v11  ;;  %v248_v31 = vld [vmem:[#allocation8 + $0xa8] sm:$0xff]  ;;  %v154_v33 = vld [vmem:[#allocation6 + $0x58] sm:$0xff]  ;;  %v245_v34 = vld [vmem:[#allocation8 + $0x90] sm:$0xff] }
  0x23   :  { %268 = vmatpush.msra.mxu2 %v251_v22  ;;  %291 = vmatpush.msra.mxu3 %v252_v23  ;;  %v246_v35 = vld [vmem:[#allocation8 + $0x98] sm:$0xff]  ;;  %v151_v36 = vld [vmem:[#allocation6 + $0x40] sm:$0xff]  ;;  %v152_v37 = vld [vmem:[#allocation6 + $0x48] sm:$0xff] }
  0x24   :  { %187 = vmatpush.msra.mxu0 %v161_v13  ;;  %210 = vmatpush.msra.mxu1 %v162_v15  ;;  %v243_v38 = vld [vmem:[#allocation8 + $0x80] sm:$0xff]  ;;  %v244_v39 = vld [vmem:[#allocation8 + $0x88] sm:$0xff]  ;;  %v149_v40 = vld [vmem:[#allocation6 + $0x30] sm:$0xff] }
  0x25   :  { %269 = vmatpush.msra.mxu2 %v249_v26  ;;  %292 = vmatpush.msra.mxu3 %v250_v27  ;;  %v150_v41 = vld [vmem:[#allocation6 + $0x38] sm:$0xff]  ;;  %v241_v42 = vld [vmem:[#allocation8 + $0x70] sm:$0xff]  ;;  %v147_v44 = vld [vmem:[#allocation6 + $0x20] sm:$0xff] }
  0x26   :  { %188 = vmatpush.msra.mxu0 %v159_v20  ;;  %211 = vmatpush.msra.mxu1 %v160_v21  ;;  %v242_v43 = vld [vmem:[#allocation8 + $0x78] sm:$0xff]  ;;  %v148_v45 = vld [vmem:[#allocation6 + $0x28] sm:$0xff]  ;;  %v239_v46 = vld [vmem:[#allocation8 + $0x60] sm:$0xff] }
  0x27   :  { %270 = vmatpush.msra.mxu2 %v247_v30  ;;  %293 = vmatpush.msra.mxu3 %v248_v31  ;;  %v240_v47 = vld [vmem:[#allocation8 + $0x68] sm:$0xff]  ;;  %v145_v48 = vld [vmem:[#allocation6 + $0x10] sm:$0xff]  ;;  %v146_v49 = vld [vmem:[#allocation6 + $0x18] sm:$0xff] }
  0x28   :  { %189 = vmatpush.msra.mxu0 %v157_v24  ;;  %212 = vmatpush.msra.mxu1 %v158_v25  ;;  %v237_v50 = vld [vmem:[#allocation8 + $0x50] sm:$0xff]  ;;  %v238_v51 = vld [vmem:[#allocation8 + $0x58] sm:$0xff]  ;;  %v143_v52 = vld [vmem:[#allocation6] sm:$0xff] }
  0x29   :  { %271 = vmatpush.msra.mxu2 %v245_v34  ;;  %294 = vmatpush.msra.mxu3 %v246_v35  ;;  %v144_v53 = vld [vmem:[#allocation6 + $0x8] sm:$0xff]  ;;  %v109_v54 = vld [vmem:[#allocation3] sm:$0xff]  ;;  %v235_v55 = vld [vmem:[#allocation8 + $0x40] sm:$0xff] }
  0x2a   :  { %190 = vmatpush.msra.mxu0 %v155_v28  ;;  %213 = vmatpush.msra.mxu1 %v156_v29  ;;  %v236_v56 = vld [vmem:[#allocation8 + $0x48] sm:$0xff]  ;;  %v233_v57 = vld [vmem:[#allocation8 + $0x30] sm:$0xff]  ;;  %v234_v58 = vld [vmem:[#allocation8 + $0x38] sm:$0xff] }
  0x2b   :  { %272 = vmatpush.msra.mxu2 %v243_v38  ;;  %295 = vmatpush.msra.mxu3 %v244_v39  ;;  %v231_v59 = vld [vmem:[#allocation8 + $0x20] sm:$0xff]  ;;  %v232_v60 = vld [vmem:[#allocation8 + $0x28] sm:$0xff]  ;;  %v229_v61 = vld [vmem:[#allocation8 + $0x10] sm:$0xff] }
  0x2c   :  { %191 = vmatpush.msra.mxu0 %v153_v32  ;;  %214 = vmatpush.msra.mxu1 %v154_v33  ;;  %v230_v62 = vld [vmem:[#allocation8 + $0x18] sm:$0xff]  ;;  %v227_v0 = vld [vmem:[#allocation8] sm:$0xff]  ;;  %v228_v1 = vld [vmem:[#allocation8 + $0x8] sm:$0xff] }
  0x2d   :  { %273 = vmatpush.msra.mxu2 %v241_v42  ;;  %296 = vmatpush.msra.mxu3 %v242_v43  ;;  %v110_v63 = vld [vmem:[#allocation3 + $0x8] sm:$0xff]  ;;  %v124_v6 = vld [vmem:[#allocation11 + $0x68] sm:$0xff]  ;;  %v123_v8 = vld [vmem:[#allocation11 + $0x60] sm:$0xff] }
  0x2e   :  { %192 = vmatpush.msra.mxu0 %v151_v36  ;;  %215 = vmatpush.msra.mxu1 %v152_v37  ;;  %v126_v2 = vld [vmem:[#allocation11 + $0x78] sm:$0xff]  ;;  %v125_v4 = vld [vmem:[#allocation11 + $0x70] sm:$0xff]  ;;  %v140_v7 = vld [vmem:[#allocation11 + $0xe8] sm:$0xff] }
  0x2f   :  { %274 = vmatpush.msra.mxu2 %v239_v46  ;;  %297 = vmatpush.msra.mxu3 %v240_v47  ;;  %v142_v3 = vld [vmem:[#allocation11 + $0xf8] sm:$0xff]  ;;  %v141_v5 = vld [vmem:[#allocation11 + $0xf0] sm:$0xff]  ;;  %v139_v9 = vld [vmem:[#allocation11 + $0xe0] sm:$0xff] }
  0x30   :  { %193 = vmatpush.msra.mxu0 %v149_v40  ;;  %216 = vmatpush.msra.mxu1 %v150_v41  ;;  %v122_v10 = vld [vmem:[#allocation11 + $0x58] sm:$0xff]  ;;  %v121_v12 = vld [vmem:[#allocation11 + $0x50] sm:$0xff]  ;;  %v120_v14 = vld [vmem:[#allocation11 + $0x48] sm:$0xff] }
  0x31   :  { %275 = vmatpush.msra.mxu2 %v237_v50  ;;  %298 = vmatpush.msra.mxu3 %v238_v51  ;;  %v138_v11 = vld [vmem:[#allocation11 + $0xd8] sm:$0xff]  ;;  %v137_v13 = vld [vmem:[#allocation11 + $0xd0] sm:$0xff]  ;;  %v136_v15 = vld [vmem:[#allocation11 + $0xc8] sm:$0xff] }
  0x32   :  { %194 = vmatpush.msra.mxu0 %v147_v44  ;;  %217 = vmatpush.msra.mxu1 %v148_v45  ;;  %v119_v16 = vld [vmem:[#allocation11 + $0x40] sm:$0xff]  ;;  %v118_v18 = vld [vmem:[#allocation11 + $0x38] sm:$0xff]  ;;  %v117_v20 = vld [vmem:[#allocation11 + $0x30] sm:$0xff] }
  0x33   :  { %276 = vmatpush.msra.mxu2 %v235_v55  ;;  %299 = vmatpush.msra.mxu3 %v236_v56  ;;  %v135_v17 = vld [vmem:[#allocation11 + $0xc0] sm:$0xff]  ;;  %v134_v19 = vld [vmem:[#allocation11 + $0xb8] sm:$0xff]  ;;  %v133_v21 = vld [vmem:[#allocation11 + $0xb0] sm:$0xff] }
  0x34   :  { %195 = vmatpush.msra.mxu0 %v145_v48  ;;  %218 = vmatpush.msra.mxu1 %v146_v49  ;;  %v175_v22 = vld [vmem:[%s816_s3] sm:$0x3]  ;;  %v115_v27 = vld [vmem:[#allocation11 + $0x20] sm:$0xff]  ;;  %v114_v29 = vld [vmem:[#allocation11 + $0x18] sm:$0xff] }
  0x35   :  { %277 = vmatpush.msra.mxu2 %v233_v57  ;;  %300 = vmatpush.msra.mxu3 %v234_v58  ;;  %v116_v23 = vld [vmem:[#allocation11 + $0x28] sm:$0xff]  ;;  %v177_v25 = vperm.slane %v175_v22, 0  ;;  %v178_v26 = vperm.slane %v175_v22, 1  ;;  %v131_v28 = vld [vmem:[#allocation11 + $0xa0] sm:$0xff]  ;;  %v130_v30 = vld [vmem:[#allocation11 + $0x98] sm:$0xff] }
  0x36   :  { %196 = vmatpush.msra.mxu0 %v143_v52  ;;  %219 = vmatpush.msra.mxu1 %v144_v53  ;;  %v132_v24 = vld [vmem:[#allocation11 + $0xa8] sm:$0xff]  ;;  %v113_v35 = vld [vmem:[#allocation11 + $0x10] sm:$0xff]  ;;  %v111_v41 = vld [vmem:[#allocation11] sm:$0xff] }
  0x37   :  { %197 = vmatmul.f32.vlgmr.msra.gmra.mxu0 %v109_v54  ;;  %220 = vmatmul.f32.vlgmr.msra.gmra.mxu1 %v109_v54  ;;  %v129_v36 = vld [vmem:[#allocation11 + $0x90] sm:$0xff]  ;;  %v112_v39 = vld [vmem:[#allocation11 + $0x8] sm:$0xff]  ;;  %v127_v42 = vld [vmem:[#allocation11 + $0x80] sm:$0xff] }
  0x38   :  { %278 = vmatpush.msra.mxu2 %v231_v59  ;;  %301 = vmatpush.msra.mxu3 %v232_v60  ;;  %v128_v40 = vld [vmem:[#allocation11 + $0x88] sm:$0xff]  ;;  %v784_v58 = vld [vmem:[#allocation9] sm:$0x3] }
  0x39   :  { %397 = vmatpush.msrb.mxu0 %v126_v2  ;;  %420 = vmatpush.msrb.mxu1 %v142_v3 }
  0x3a   :  { %279 = vmatpush.msra.mxu2 %v229_v61  ;;  %302 = vmatpush.msra.mxu3 %v230_v62 }
  0x3b   :  { %398 = vmatpush.msrb.mxu0 %v125_v4  ;;  %421 = vmatpush.msrb.mxu1 %v141_v5 }
  0x3c   :  { %280 = vmatpush.msra.mxu2 %v227_v0  ;;  %303 = vmatpush.msra.mxu3 %v228_v1 }
  0x3d   :  { %281 = vmatmul.f32.vlgmr.msra.gmra.mxu2 %v109_v54  ;;  %304 = vmatmul.f32.vlgmr.msra.gmra.mxu3 %v109_v54 }
  0x3e   :  { %485 = vmatpush.msrb.mxu2 %v126_v2  ;;  %501 = vmatpush.msrb.mxu3 %v142_v3  ;;  %v261_v2 = vperm.slane %v784_v58, 0 }
  0x3f   :  { %200 = vmatmul.f32.gmra.mxu0 %v110_v63  ;;  %223 = vmatmul.f32.gmra.mxu1 %v110_v63 }
  0x40   :  { %486 = vmatpush.msrb.mxu2 %v125_v4  ;;  %502 = vmatpush.msrb.mxu3 %v141_v5 }
  0x41   :  { %399 = vmatpush.msrb.mxu0 %v124_v6  ;;  %422 = vmatpush.msrb.mxu1 %v140_v7 }
  0x42   :  { %487 = vmatpush.msrb.mxu2 %v124_v6  ;;  %503 = vmatpush.msrb.mxu3 %v140_v7 }
  0x43   :  { %400 = vmatpush.msrb.mxu0 %v123_v8  ;;  %423 = vmatpush.msrb.mxu1 %v139_v9 }
  0x44   :  { %488 = vmatpush.msrb.mxu2 %v123_v8  ;;  %504 = vmatpush.msrb.mxu3 %v139_v9  ;;  %v262_v8 = vperm.slane %v784_v58, 1 }
  0x45   :  { %284 = vmatmul.f32.gmra.mxu2 %v110_v63  ;;  %307 = vmatmul.f32.gmra.mxu3 %v110_v63 }
  0x46   :  { %401 = vmatpush.msrb.mxu0 %v122_v10  ;;  %424 = vmatpush.msrb.mxu1 %v138_v11 }
  0x47   :  { %489 = vmatpush.msrb.mxu2 %v122_v10  ;;  %505 = vmatpush.msrb.mxu3 %v138_v11 }
  0x48   :  { %402 = vmatpush.msrb.mxu0 %v121_v12  ;;  %425 = vmatpush.msrb.mxu1 %v137_v13 }
  0x49   :  { %490 = vmatpush.msrb.mxu2 %v121_v12  ;;  %506 = vmatpush.msrb.mxu3 %v137_v13 }
  0x4a   :  { %403 = vmatpush.msrb.mxu0 %v120_v14  ;;  %426 = vmatpush.msrb.mxu1 %v136_v15 }
  0x4b   :  { %491 = vmatpush.msrb.mxu2 %v120_v14  ;;  %507 = vmatpush.msrb.mxu3 %v136_v15 }
  0x4c   :  { %404 = vmatpush.msrb.mxu0 %v119_v16  ;;  %427 = vmatpush.msrb.mxu1 %v135_v17 }
  0x4d   :  { %492 = vmatpush.msrb.mxu2 %v119_v16  ;;  %508 = vmatpush.msrb.mxu3 %v135_v17 }
  0x4e   :  { %405 = vmatpush.msrb.mxu0 %v118_v18  ;;  %428 = vmatpush.msrb.mxu1 %v134_v19 }
  0x4f   :  { %493 = vmatpush.msrb.mxu2 %v118_v18  ;;  %509 = vmatpush.msrb.mxu3 %v134_v19 }
  0x50   :  { %406 = vmatpush.msrb.mxu0 %v117_v20  ;;  %429 = vmatpush.msrb.mxu1 %v133_v21 }
  0x51   :  { %494 = vmatpush.msrb.mxu2 %v117_v20  ;;  %510 = vmatpush.msrb.mxu3 %v133_v21 }
  0x52   :  { %407 = vmatpush.msrb.mxu0 %v116_v23  ;;  %430 = vmatpush.msrb.mxu1 %v132_v24 }
  0x53   :  { %495 = vmatpush.msrb.mxu2 %v116_v23  ;;  %511 = vmatpush.msrb.mxu3 %v132_v24 }
  0x54   :  { %408 = vmatpush.msrb.mxu0 %v115_v27  ;;  %431 = vmatpush.msrb.mxu1 %v131_v28 }
  0x55   :  { %496 = vmatpush.msrb.mxu2 %v115_v27  ;;  %512 = vmatpush.msrb.mxu3 %v131_v28 }
  0x56   :  { %409 = vmatpush.msrb.mxu0 %v114_v29  ;;  %432 = vmatpush.msrb.mxu1 %v130_v30 }
  0x57   :  { %497 = vmatpush.msrb.mxu2 %v114_v29  ;;  %513 = vmatpush.msrb.mxu3 %v130_v30 }
  0x58   :  { %410 = vmatpush.msrb.mxu0 %v113_v35  ;;  %433 = vmatpush.msrb.mxu1 %v129_v36 }
  0x59   :  { %498 = vmatpush.msrb.mxu2 %v113_v35  ;;  %514 = vmatpush.msrb.mxu3 %v129_v36 }
  0x5a   :  { %411 = vmatpush.msrb.mxu0 %v112_v39  ;;  %434 = vmatpush.msrb.mxu1 %v128_v40 }
  0x5b   :  { %499 = vmatpush.msrb.mxu2 %v112_v39  ;;  %515 = vmatpush.msrb.mxu3 %v128_v40 }
  0x5c   :  { %412 = vmatpush.msrb.mxu0 %v111_v41  ;;  %435 = vmatpush.msrb.mxu1 %v127_v42 }
  0x5d   :  { %500 = vmatpush.msrb.mxu2 %v111_v41  ;;  %516 = vmatpush.msrb.mxu3 %v127_v42 }
  0xb4   :  { %v198_v31 = vpop.f32.mrf.mxu0  ;;  %v221_v32 = vpop.f32.mrf.mxu1 }
  0xb5   :  { %v770_v33 = vadd.f32 %v198_v31, %v177_v25  ;;  %v772_v34 = vadd.f32 %v221_v32, %v178_v26 }
  0xb7   :  { %v481_v37 = vmul.f32 -1.442695, %v770_v33  ;;  %v482_v38 = vmul.f32 -1.442695, %v772_v34 }
  0xb9   :  { %528 = vpow2.f32 %v481_v37 }
  0xba   :  { %530 = vpow2.f32 %v482_v38 }
  0xbc   :  { %v201_v43 = vpop.f32.mrf.mxu0  ;;  %v224_v44 = vpop.f32.mrf.mxu1 }
  0xbd   :  { %v776_v45 = vadd.f32 %v201_v43, %v177_v25  ;;  %v778_v46 = vadd.f32 %v224_v44, %v178_v26 }
  0xbf   :  { %v529_v47 = vpop.eup %528  ;;  %v483_v48 = vmul.f32 -1.442695, %v776_v45  ;;  %v484_v51 = vmul.f32 -1.442695, %v778_v46 }
  0xc0   :  { %v531_v49 = vpop.eup %530  ;;  %v323_v50 = vadd.f32 1.0, %v529_v47  ;;  %v282_v3 = vpop.f32.mrf.mxu2 }
  0xc1   :  { %v324_v52 = vadd.f32 1.0, %v531_v49  ;;  %532 = vpow2.f32 %v483_v48  ;;  %v305_v10 = vpop.f32.mrf.mxu3  ;;  %v283_v17 = vadd.f32 %v282_v3, %v261_v2 }
  0xc2   :  { %534 = vrcp.f32 %v323_v50  ;;  %v336_v63 = vand.u32 2147483647, %v323_v50  ;;  %v338_v0 = vand.u32 2147483648, %v323_v50  ;;  %vm332_vm2 = vweird.f32 %v323_v50 }
  0xc3   :  { %536 = vrcp.f32 %v324_v52  ;;  %v353_v5 = vand.u32 2147483648, %v324_v52  ;;  %v351_v7 = vand.u32 2147483647, %v324_v52  ;;  %vm347_vm5 = vweird.f32 %v324_v52 }
  0xc4   :  { %538 = vpow2.f32 %v484_v51  ;;  %vm337_vm4 = vcmp.eq.f32.partialorder %v336_v63, 8.507059e+37  ;;  %v339_v12 = vor.u32 1.1754944e-38, %v338_v0  ;;  %v306_v20 = vadd.f32 %v305_v10, %v262_v8 }
  0xc5   :  { %v354_v15 = vor.u32 1.1754944e-38, %v353_v5  ;;  %vm352_vm7 = vcmp.eq.f32.partialorder %v351_v7, 8.507059e+37 }
  0xc7   :  { %v533_v53 = vpop.eup %532 }
  0xc8   :  { %v535_v54 = vpop.eup %534  ;;  %v782_v55 = vadd.f32 1.0, %v533_v53  ;;  %v285_v35 = vpop.f32.mrf.mxu2 }
  0xc9   :  { %v537_v56 = vpop.eup %536  ;;  %v328_v57 = vmul.f32 %v535_v54, %v323_v50  ;;  %vm333_vm0 = vweird.f32 %v535_v54  ;;  %v286_v40 = vadd.f32 %v285_v35, %v261_v2  ;;  %v308_v41 = vpop.f32.mrf.mxu3 }
  0xca   :  { %v539_v59 = vpop.eup %538  ;;  %v343_v60 = vmul.f32 %v537_v56, %v324_v52  ;;  %540 = vrcp.f32 %v782_v55  ;;  %vm348_vm1 = vweird.f32 %v537_v56  ;;  %vm334_vm3 = vmor %vm332_vm2, %vm333_vm0  ;;  %v368_v26 = vand.u32 2147483648, %v782_v55 }
  0xcb   :  { %v329_v61 = vsub.f32 1.0, %v328_v57  ;;  %v787_v62 = vadd.f32 1.0, %v539_v59  ;;  %vm349_vm6 = vmor %vm347_vm5, %vm348_vm1  ;;  %v366_v29 = vand.u32 2147483647, %v782_v55  ;;  %vm362_vm9 = vweird.f32 %v782_v55 }
  0xcc   :  { %v344_v1 = vsub.f32 1.0, %v343_v60  ;;  %v309_v49 = vadd.f32 %v308_v41, %v262_v8 }
  0xcd   :  { %v330_v4 = vmul.f32 %v535_v54, %v329_v61  ;;  %542 = vrcp.f32 %v787_v62  ;;  %v381_v38 = vand.u32 2147483647, %v787_v62  ;;  %vm367_vm12 = vcmp.eq.f32.partialorder %v366_v29, 8.507059e+37 }
  0xce   :  { %v345_v6 = vmul.f32 %v537_v56, %v344_v1  ;;  %vm377_vm13 = vweird.f32 %v787_v62 }
  0xcf   :  { %v331_v9 = vadd.f32 %v535_v54, %v330_v4  ;;  %vm382_vm15 = vcmp.eq.f32.partialorder %v381_v38, 8.507059e+37 }
  0xd0   :  { %v541_v11 = vpop.eup %540  ;;  %v346_v13 = vadd.f32 %v537_v56, %v345_v6 }
  0xd1   :  { %v335_v14 = vsel %vm334_vm3, %v535_v54, %v331_v9  ;;  %v358_v16 = vmul.f32 %v541_v11, %v782_v55  ;;  %vm363_vm8 = vweird.f32 %v541_v11  ;;  %v527_v55 = vld [vmem:[%s819_s6] ss:$0 sm:$0xff] }
  0xd2   :  { %v340_v18 = vsel %vm337_vm4, %v339_v12, %v335_v14  ;;  %v350_v19 = vsel %vm349_vm6, %v537_v56, %v346_v13  ;;  %vm364_vm10 = vmor %vm362_vm9, %vm363_vm8 }
  0xd3   :  { %v543_v21 = vpop.eup %542  ;;  %v387_v22 = vmul.f32 %v340_v18, %v770_v33  ;;  %v355_v23 = vsel %vm352_vm7, %v354_v15, %v350_v19  ;;  %v359_v24 = vsub.f32 1.0, %v358_v16  ;;  %v383_v33 = vand.u32 2147483648, %v787_v62 }
  0xd4   :  { %v388_v25 = vmul.f32 %v355_v23, %v772_v34  ;;  %v373_v27 = vmul.f32 %v543_v21, %v787_v62  ;;  %v369_v34 = vor.u32 1.1754944e-38, %v368_v26  ;;  %vm378_vm11 = vweird.f32 %v543_v21 }
  0xd5   :  { %v360_v28 = vmul.f32 %v541_v11, %v359_v24  ;;  %v391_v30 = vmul.f32 %v387_v22, %v283_v17  ;;  %vm379_vm14 = vmor %vm377_vm13, %vm378_vm11  ;;  %v384_v47 = vor.u32 1.1754944e-38, %v383_v33 }
  0xd6   :  { %v374_v31 = vsub.f32 1.0, %v373_v27  ;;  %v392_v32 = vmul.f32 %v388_v25, %v306_v20 }
  0xd7   :  { %v361_v36 = vadd.f32 %v541_v11, %v360_v28  ;;  %413 = vmatmul.f32.vlgmr.msrb.gmra.mxu0 %v391_v30 }
  0xd8   :  { %v375_v37 = vmul.f32 %v543_v21, %v374_v31  ;;  %436 = vmatmul.f32.vlgmr.msrb.gmra.mxu1 %v392_v32 }
  0xd9   :  { %v365_v39 = vsel %vm364_vm10, %v541_v11, %v361_v36 }
  0xda   :  { %v370_v42 = vsel %vm367_vm12, %v369_v34, %v365_v39  ;;  %v376_v43 = vadd.f32 %v543_v21, %v375_v37 }
  0xdb   :  { %v389_v44 = vmul.f32 %v370_v42, %v776_v45 }
  0xdc   :  { %v380_v48 = vsel %vm379_vm14, %v543_v21, %v376_v43 }
  0xdd   :  { %v385_v50 = vsel %vm382_vm15, %v384_v47, %v380_v48  ;;  %v393_v51 = vmul.f32 %v389_v44, %v286_v40 }
  0xde   :  { %v390_v52 = vmul.f32 %v385_v50, %v778_v46 }
  0xdf   :  { %416 = vmatmul.f32.vlgmr.msrb.gmra.mxu2 %v393_v51 }
  0xe0   :  { %v394_v53 = vmul.f32 %v390_v52, %v309_v49 }
  0xe2   :  { %439 = vmatmul.f32.vlgmr.msrb.gmra.mxu3 %v394_v53 }
 0x154   :  { %v414_v54 = vpop.f32.mrf.mxu0 }
 0x155   :  { %v437_v56 = vpop.f32.mrf.mxu1 }
 0x156   :  { %v438_v57 = vadd.f32 %v437_v56, %v414_v54 }
 0x158   :  { %v456_v45 = vadd.f32 %v527_v55, %v438_v57 }
 0x15a   :  { %458 = vst [vmem:[#allocation12] sm:$0xff] %v456_v45 }
 0x162   :  { %v417_v58 = vpop.f32.mrf.mxu2 }
 0x165   :  { %v440_v59 = vpop.f32.mrf.mxu3 }
 0x166   :  { %v441_v46 = vadd.f32 %v440_v59, %v417_v58 }
 0x168   :  { %v457_v60 = vadd.f32 %v527_v55, %v441_v46 }
 0x16a   :  { %459 = vst [vmem:[#allocation12 + $0x8] sm:$0xff] %v457_v60 }
 0x16b   :  { %472 = dma.vmem_to_hbm [thread:$0]  %s465_s29, 256, %s467_s9, [#allocation5], %s701_s19, %s701_s19, %s702_s20  }
 0x16c   :  { %694 = dma.done.wait [#allocation5], 256  }
 0x16d   :  { %695 = vsyncadd [#allocation5], 4294967040 }
 0x16e   :  { %477 = vsyncpa [#allocation4], 1 }
 0x16f   :  { %478 = vsyncpa [#allocation7], 1 }
 0x170   :  { %479 = vsyncpa [#allocation10], 1 }
 0x171   :  { %480 = vsyncpa [#allocation5], 1 }

</bundles_post_ra>
